<compile_context>
chip_gen: v5e
topology: v5e:2x2
jax: 0.10.0
libtpu: 0.0.40
codegen_flags: <defaults>
</compile_context>

<pallas_src>
import functools

import jax
import jax.numpy as jnp
import numpy as np
from jax.experimental import pallas as pl
from jax.experimental.pallas import tpu as pltpu

EPS = 1e-5


# ---------------------------------------------------------------------------
# In-kernel helpers
# ---------------------------------------------------------------------------
def _conv3x3_rows(a_rows, band_ref, H, compute_dtype):
    """3x3 conv (stride 1, pad 1) on lane-fused rows (M, W*Cin), M = NB*H.

    Vertical halo via XLU roll + per-row mask (covers both the image top/bottom
    zero padding and the sample boundaries inside a multi-sample block).
    band_ref: (3*W*Cin, W*Cout) band matrix with the kw taps pre-folded.
    Returns f32 (M, W*Cout).
    """
    M, WC = a_rows.shape
    a = a_rows.astype(compute_dtype)
    row = jax.lax.broadcasted_iota(jnp.int32, (M, WC), 0) % H
    a_dn = jnp.where(row == 0, 0.0, pltpu.roll(a, shift=1, axis=0))        # row h-1
    a_up = jnp.where(row == H - 1, 0.0, pltpu.roll(a, shift=M - 1, axis=0))  # row h+1
    lhs = jnp.concatenate([a_dn, a, a_up], axis=-1)                        # (M, 3*WC)
    return jnp.dot(lhs, band_ref[...], preferred_element_type=jnp.float32)


def _fold_bn(s1_ref, s2_ref, g_ref, b_ref, C, count):
    """Finish the BN reduction (per-channel mean/var from lane-fused partial sums)
    and fold the affine transform into lane-fused (1, W*C) scale / shift.

    The per-channel reduction over the W positions fused into the lane axis is a
    tiny matmul with the {0,1} channel-sum matrix R[i,j] = (i%C == j%C), which also
    re-broadcasts the per-channel result across W — everything stays 128-lane dense.
    Note: single-pass E[x^2]-E[x]^2; fine for normalized-scale activations.
    """
    f32 = jnp.float32
    tot1 = jnp.sum(s1_ref[...], axis=0)                     # (nb, 1, WC) -> (1, WC)
    tot2 = jnp.sum(s2_ref[...], axis=0)
    WC = tot1.shape[-1]
    ii = jax.lax.broadcasted_iota(jnp.int32, (WC, WC), 0) % C
    jj = jax.lax.broadcasted_iota(jnp.int32, (WC, WC), 1) % C
    rmat = (ii == jj).astype(f32)
    t1 = jnp.broadcast_to(tot1, (8, WC))                    # sublane-aligned M for MXU
    t2 = jnp.broadcast_to(tot2, (8, WC))
    ch1 = jnp.dot(t1, rmat, preferred_element_type=f32)[0:1, :]   # per-channel, tiled
    ch2 = jnp.dot(t2, rmat, preferred_element_type=f32)[0:1, :]
    inv_count = 1.0 / count
    mean = ch1 * inv_count
    var = ch2 * inv_count - mean * mean                     # biased (BN2d forward)
    inv = jax.lax.rsqrt(var + EPS)
    scale = g_ref[...] * inv
    shift = b_ref[...] - mean * scale
    return scale, shift


# ---------------------------------------------------------------------------
# Kernels (grid over batch blocks; each step handles NB whole samples)
# ---------------------------------------------------------------------------
def _conv_a_kernel(H, compute_dtype, x_ref, band_ref, y_ref, s1_ref, s2_ref):
    """conv_a + per-block partial sums for BN_a statistics (from the f32 acc)."""
    acc = _conv3x3_rows(x_ref[...], band_ref, H, compute_dtype)   # (M, WC) f32
    y_ref[...] = acc.astype(y_ref.dtype)                          # bf16 storage OK:
    s1_ref[...] = jnp.sum(acc, axis=0, keepdims=True)             # stats come from f32
    s2_ref[...] = jnp.sum(acc * acc, axis=0, keepdims=True)


def _conv_b_kernel(H, C, count, compute_dtype,
                   y1_ref, s1_ref, s2_ref, g_ref, b_ref, band_ref,
                   y2_ref, t1_ref, t2_ref):
    """In-kernel BN_a fold -> ReLU -> conv_b + BN_b partial sums."""
    scale, shift = _fold_bn(s1_ref, s2_ref, g_ref, b_ref, C, count)
    a = jnp.maximum(y1_ref[...].astype(jnp.float32) * scale + shift, 0.0)
    acc = _conv3x3_rows(a, band_ref, H, compute_dtype)
    y2_ref[...] = acc.astype(y2_ref.dtype)
    t1_ref[...] = jnp.sum(acc, axis=0, keepdims=True)
    t2_ref[...] = jnp.sum(acc * acc, axis=0, keepdims=True)


def _epilogue_kernel(C, count, x_ref, y2_ref, s1_ref, s2_ref, g_ref, b_ref, o_ref):
    """In-kernel BN_b fold -> residual add -> ReLU."""
    scale, shift = _fold_bn(s1_ref, s2_ref, g_ref, b_ref, C, count)
    o_ref[...] = jnp.maximum(
        x_ref[...] + y2_ref[...].astype(jnp.float32) * scale + shift, 0.0)


# ---------------------------------------------------------------------------
# Wrapper-side helpers
# ---------------------------------------------------------------------------
def _band_weights(w_hwio, W, dtype):
    """Fold the kw taps of a 3x3 HWIO weight into a flattened (3*W*Cin, W*Cout) band.

    B[kh*W*Cin + wi*Cin + ci, wo*Cout + co] = w[kh, wi-wo+1, ci, co] if the kw index
    is in range else 0; the missing entries at wo = 0 / W-1 reproduce the horizontal
    zero padding exactly.
    """
    KH, KW, Cin, Cout = w_hwio.shape
    sel = np.zeros((KW, W, W), np.float32)       # sel[kw, wi, wo] = 1 iff wi == wo+kw-1
    for kw in range(KW):
        for wo in range(W):
            wi = wo + kw - 1
            if 0 <= wi < W:
                sel[kw, wi, wo] = 1.0
    band = jnp.einsum("kio,hkcp->hicop", jnp.asarray(sel), w_hwio.astype(jnp.float32))
    return band.reshape(KH * W * Cin, W * Cout).astype(dtype)


def _pick_samples_per_step(N, H, target_rows=256):
    """Largest divisor of N whose block has <= target_rows matmul rows.

    Keeps blocks big (few grid steps, large DMAs, full MXU rows) while larger
    batches still yield >=2 'parallel' steps for v7x's two TensorCores.
    """
    nb = 1
    for cand in range(1, N + 1):
        if N % cand == 0 and cand * H <= max(target_rows, H):
            nb = cand
    return nb


# ---------------------------------------------------------------------------
# Primary (transpose-free, lane-fused) entry point
# ---------------------------------------------------------------------------
@functools.partial(jax.jit, static_argnames=("H", "compute_dtype"))
def resnet_basicblock_rows(x_rows, wa, ga, ba, wb, gb, bb, *, H,
                           compute_dtype=jnp.bfloat16):
    """ResNet basic block forward (stride=1, no downsample), training-mode BN.

    x_rows: (N*H, W*C) float32 — NHWC rows with W and C fused on the lane axis.
    wa / wb: (3, 3, C, C) HWIO conv weights (bias-free).  Returns (N*H, W*C) f32.
    Chain this entry point across the network to avoid NCHW<->NHWC transposes.
    """
    rows, WC = x_rows.shape
    C = wa.shape[2]
    W = WC // C
    N = rows // H
    assert wa.shape == (3, 3, C, C) and wb.shape == (3, 3, C, C), \
        "stride=1 / no-downsample path requires inplanes == planes"
    assert W * C == WC and N * H == rows
    assert WC % 128 == 0, "lane-fused row width W*C must be a multiple of 128"
    f32 = jnp.float32

    NB = _pick_samples_per_step(N, H)
    n_blocks = N // NB
    M_blk = NB * H
    assert M_blk % 8 == 0
    count = float(N * H * W)                       # BN reduction count per channel

    band_a = _band_weights(wa, W, compute_dtype)   # (3*WC, WC)
    band_b = _band_weights(wb, W, compute_dtype)
    ga_t = jnp.tile(ga.astype(f32), W).reshape(1, WC)
    ba_t = jnp.tile(ba.astype(f32), W).reshape(1, WC)
    gb_t = jnp.tile(gb.astype(f32), W).reshape(1, WC)
    bb_t = jnp.tile(bb.astype(f32), W).reshape(1, WC)

    cparams = pltpu.CompilerParams(dimension_semantics=("parallel",))
    act_spec = pl.BlockSpec((M_blk, WC), lambda b: (b, 0))
    stat_out_spec = pl.BlockSpec((None, 1, WC), lambda b: (b, 0, 0))
    stat_in_spec = pl.BlockSpec((n_blocks, 1, WC), lambda b: (0, 0, 0))
    vec_spec = pl.BlockSpec((1, WC), lambda b: (0, 0))
    band_spec = pl.BlockSpec((3 * WC, WC), lambda b: (0, 0))

    x_bytes = 4 * rows * WC
    y_bytes = jnp.dtype(compute_dtype).itemsize * rows * WC
    band_bytes = int(band_a.size) * band_a.dtype.itemsize
    conv_cost = pl.CostEstimate(flops=2 * rows * 3 * WC * WC, transcendentals=0,
                                bytes_accessed=x_bytes + y_bytes + band_bytes)

    # ---- pass 1: conv_a + BN_a partial sums --------------------------------
    y1, s1a, s2a = pl.pallas_call(
        functools.partial(_conv_a_kernel, H, compute_dtype),
        grid=(n_blocks,),
        in_specs=[act_spec, band_spec],
        out_specs=(act_spec, stat_out_spec, stat_out_spec),
        out_shape=(jax.ShapeDtypeStruct((rows, WC), compute_dtype),
                   jax.ShapeDtypeStruct((n_blocks, 1, WC), f32),
                   jax.ShapeDtypeStruct((n_blocks, 1, WC), f32)),
        compiler_params=cparams,
        cost_estimate=conv_cost,
    )(x_rows, band_a)

    # ---- pass 2: BN_a fold -> ReLU -> conv_b + BN_b partial sums -----------
    y2, s1b, s2b = pl.pallas_call(
        functools.partial(_conv_b_kernel, H, C, count, compute_dtype),
        grid=(n_blocks,),
        in_specs=[act_spec, stat_in_spec, stat_in_spec, vec_spec, vec_spec,
                  band_spec],
        out_specs=(act_spec, stat_out_spec, stat_out_spec),
        out_shape=(jax.ShapeDtypeStruct((rows, WC), compute_dtype),
                   jax.ShapeDtypeStruct((n_blocks, 1, WC), f32),
                   jax.ShapeDtypeStruct((n_blocks, 1, WC), f32)),
        compiler_params=cparams,
        cost_estimate=conv_cost,
    )(y1, s1a, s2a, ga_t, ba_t, band_b)

    # ---- pass 3: BN_b fold -> residual add -> ReLU --------------------------
    out_rows = pl.pallas_call(
        functools.partial(_epilogue_kernel, C, count),
        grid=(n_blocks,),
        in_specs=[act_spec, act_spec, stat_in_spec, stat_in_spec, vec_spec,
                  vec_spec],
        out_specs=act_spec,
        out_shape=jax.ShapeDtypeStruct((rows, WC), f32),
        compiler_params=cparams,
        cost_estimate=pl.CostEstimate(flops=5 * rows * WC, transcendentals=0,
                                      bytes_accessed=2 * x_bytes + y_bytes),
    )(x_rows, y2, s1b, s2b, gb_t, bb_t)

    return out_rows


# ---------------------------------------------------------------------------
# NCHW boundary wrapper (matches the PyTorch module I/O).  Inside a full network
# prefer chaining resnet_basicblock_rows and skip these layout round trips.
# ---------------------------------------------------------------------------
@functools.partial(jax.jit, static_argnames=("compute_dtype",))
def resnet_basicblock(x_nchw, wa, ga, ba, wb, gb, bb, *, compute_dtype=jnp.bfloat16):
    N, C, H, W = x_nchw.shape
    x_rows = jnp.transpose(x_nchw.astype(jnp.float32),
                           (0, 2, 3, 1)).reshape(N * H, W * C)
    out_rows = resnet_basicblock_rows(x_rows, wa, ga, ba, wb, gb, bb, H=H,
                                      compute_dtype=compute_dtype)
    return jnp.transpose(out_rows.reshape(N, H, W, C), (0, 3, 1, 2))


# ---------------------------------------------------------------------------
# Pure-JAX (XLA) reference mirroring the PyTorch forward
# ---------------------------------------------------------------------------
def _reference(x_nchw, wa, ga, ba, wb, gb, bb):
    x = jnp.transpose(x_nchw, (0, 2, 3, 1))  # NHWC
    dn = jax.lax.conv_dimension_numbers(x.shape, wa.shape, ("NHWC", "HWIO", "NHWC"))

    def conv(z, w):
        return jax.lax.conv_general_dilated(z, w, (1, 1), ((1, 1), (1, 1)),
                                            dimension_numbers=dn)

    def bn(z, g, b):
        mean = jnp.mean(z, axis=(0, 1, 2), keepdims=True)
        var = jnp.var(z, axis=(0, 1, 2), keepdims=True)   # biased, training-mode
        return (z - mean) * jax.lax.rsqrt(var + EPS) * g + b

    y = jax.nn.relu(bn(conv(x, wa), ga, ba))
    y = bn(conv(y, wb), gb, bb)
    y = jax.nn.relu(x + y)
    return jnp.transpose(y, (0, 3, 1, 2))


if __name__ == "__main__":
    key = jax.random.PRNGKey(0)
    N, C, H, W = 2, 8, 16, 16   # inplanes = planes = 8, W*C = 128 (lane-dense rows)

    k = jax.random.split(key, 7)
    x = jax.random.normal(k[0], (N, C, H, W), jnp.float32)
    wa = jax.random.normal(k[1], (3, 3, C, C), jnp.float32) * (1.0 / np.sqrt(9 * C))
    wb = jax.random.normal(k[2], (3, 3, C, C), jnp.float32) * (1.0 / np.sqrt(9 * C))
    ga = 1.0 + 0.1 * jax.random.normal(k[3], (C,), jnp.float32)
    ba = 0.1 * jax.random.normal(k[4], (C,), jnp.float32)
    gb = 1.0 + 0.1 * jax.random.normal(k[5], (C,), jnp.float32)
    bb = 0.1 * jax.random.normal(k[6], (C,), jnp.float32)

    ref = jax.block_until_ready(_reference(x, wa, ga, ba, wb, gb, bb))

    # Strict check: f32 compute + f32 intermediates must match the XLA reference.
    out_f32 = jax.block_until_ready(
        resnet_basicblock(x, wa, ga, ba, wb, gb, bb, compute_dtype=jnp.float32))
    assert out_f32.shape == (N, C, H, W)
    np.testing.assert_allclose(np.asarray(out_f32), np.asarray(ref),
                               rtol=1e-4, atol=1e-4)

    # Performance path: bf16 MXU operands + bf16 intermediate storage (loose check;
    # BN statistics are still taken from the f32 accumulators in-kernel).
    out_bf16 = jax.block_until_ready(
        resnet_basicblock(x, wa, ga, ba, wb, gb, bb, compute_dtype=jnp.bfloat16))
    np.testing.assert_allclose(np.asarray(out_bf16), np.asarray(ref),
                               rtol=1e-1, atol=1e-1)

    print("KERNEL_OK")
</pallas_src>

<mosaic_0001>
module attributes {stable_mosaic.version = 11 : i64} {
  func.func @_conv_a_kernel(%arg0: i32, %arg1: memref<32x128xf32, #tpu.memory_space<vmem>>, %arg2: memref<384x128xf32, #tpu.memory_space<vmem>>, %arg3: memref<32x128xf32, #tpu.memory_space<vmem>>, %arg4: memref<1x1x128xf32, #tpu.memory_space<vmem>>, %arg5: memref<1x1x128xf32, #tpu.memory_space<vmem>>) attributes {dimension_semantics = [#tpu.dimension_semantics<parallel>], iteration_bounds = array<i64: 1>, scalar_prefetch = 0 : i64, scratch_operands = 0 : i64, tpu.core_type = #tpu.core_type<tc>, window_params = [{transform_indices = @transform_0, window_bounds = array<i64: 32, 128>}, {pipeline_mode = #tpu.pipeline_mode<synchronous>, transform_indices = @transform_1, window_bounds = array<i64: 384, 128>}, {transform_indices = @transform_2, window_bounds = array<i64: 32, 128>}, {transform_indices = @transform_3, window_bounds = array<i64: 1, 1, 128>}, {transform_indices = @transform_4, window_bounds = array<i64: 1, 1, 128>}]} {
    %c0 = arith.constant 0 : index
    %c0_0 = arith.constant 0 : index
    %0 = vector.load %arg1[%c0, %c0_0] : memref<32x128xf32, #tpu.memory_space<vmem>>, vector<32x128xf32>
    %1 = tpu.iota {dimensions = array<i32: 0>} : vector<32x128xi32>
    %c16_i32 = arith.constant 16 : i32
    %c0_i32 = arith.constant 0 : i32
    %2 = arith.cmpi eq, %c16_i32, %c0_i32 : i32
    %c1_i32 = arith.constant 1 : i32
    %3 = arith.select %2, %c1_i32, %c16_i32 : i32
    %4 = vector.broadcast %3 : i32 to vector<32x128xi32>
    %5 = arith.remsi %1, %4 : vector<32x128xi32>
    %c0_i32_1 = arith.constant 0 : i32
    %6 = vector.broadcast %c0_i32_1 : i32 to vector<32x128xi32>
    %7 = arith.cmpi ne, %5, %6 : vector<32x128xi32>
    %c0_i32_2 = arith.constant 0 : i32
    %8 = vector.broadcast %c0_i32_2 : i32 to vector<32x128xi32>
    %9 = arith.cmpi slt, %5, %8 : vector<32x128xi32>
    %c0_i32_3 = arith.constant 0 : i32
    %10 = arith.cmpi slt, %3, %c0_i32_3 : i32
    %11 = vector.broadcast %10 : i1 to vector<32x128xi1>
    %12 = vector.broadcast %11 : vector<32x128xi1> to vector<32x128xi1>
    %13 = arith.xori %9, %12 : vector<32x128xi1>
    %14 = arith.andi %13, %7 : vector<32x128xi1>
    %15 = vector.broadcast %3 : i32 to vector<32x128xi32>
    %16 = arith.addi %5, %15 : vector<32x128xi32>
    %17 = arith.select %14, %16, %5 : vector<32x128xi1>, vector<32x128xi32>
    %c0_i32_4 = arith.constant 0 : i32
    %18 = vector.broadcast %c0_i32_4 : i32 to vector<32x128xi32>
    %19 = arith.cmpi eq, %17, %18 : vector<32x128xi32>
    %c1_i32_5 = arith.constant 1 : i32
    %20 = tpu.dynamic_rotate %0 by %c1_i32_5 dim 0 : vector<32x128xf32>, i32 -> vector<32x128xf32>
    %cst = arith.constant 0.000000e+00 : f32
    %21 = vector.broadcast %cst : f32 to vector<32x128xf32>
    %22 = arith.select %19, %21, %20 : vector<32x128xi1>, vector<32x128xf32>
    %c15_i32 = arith.constant 15 : i32
    %23 = vector.broadcast %c15_i32 : i32 to vector<32x128xi32>
    %24 = arith.cmpi eq, %17, %23 : vector<32x128xi32>
    %c31_i32 = arith.constant 31 : i32
    %25 = tpu.dynamic_rotate %0 by %c31_i32 dim 0 : vector<32x128xf32>, i32 -> vector<32x128xf32>
    %cst_6 = arith.constant 0.000000e+00 : f32
    %26 = vector.broadcast %cst_6 : f32 to vector<32x128xf32>
    %27 = arith.select %24, %26, %25 : vector<32x128xi1>, vector<32x128xf32>
    %28 = tpu.concatenate %22, %0, %27 in 1 : vector<32x128xf32>, vector<32x128xf32>, vector<32x128xf32> -> vector<32x384xf32>
    %c0_7 = arith.constant 0 : index
    %c0_8 = arith.constant 0 : index
    %29 = vector.load %arg2[%c0_7, %c0_8] : memref<384x128xf32, #tpu.memory_space<vmem>>, vector<384x128xf32>
    %cst_9 = arith.constant dense<0.000000e+00> : vector<32x128xf32>
    %30 = tpu.matmul %28, %29, %cst_9 {dimension_numbers = #tpu.dot_dimension_numbers<[1], [0], [0], [1], [0, 0, 1, 1], [], []>} : vector<32x384xf32>, vector<384x128xf32>, vector<32x128xf32> -> vector<32x128xf32>
    %c0_10 = arith.constant 0 : index
    %c0_11 = arith.constant 0 : index
    %31 = vector.load %arg3[%c0_10, %c0_11] : memref<32x128xf32, #tpu.memory_space<vmem>>, vector<32x128xf32>
    tpu.vector_store %arg3[%c0_10, %c0_11], %30 {strides = array<i32>} : memref<32x128xf32, #tpu.memory_space<vmem>>, vector<32x128xf32>,
    %cst_12 = arith.constant dense<0.000000e+00> : vector<128xf32>
    %32 = vector.multi_reduction <add>, %30, %cst_12 [0] : vector<32x128xf32> to vector<128xf32>
    %33 = vector.shape_cast %32 : vector<128xf32> to vector<1x128xf32>
    %c0_13 = arith.constant 0 : index
    %c0_14 = arith.constant 0 : index
    %c0_15 = arith.constant 0 : index
    %34 = vector.load %arg4[%c0_13, %c0_14, %c0_15] : memref<1x1x128xf32, #tpu.memory_space<vmem>>, vector<1x1x128xf32>
    %35 = vector.shape_cast %34 : vector<1x1x128xf32> to vector<1x128xf32>
    %36 = vector.shape_cast %33 : vector<1x128xf32> to vector<1x1x128xf32>
    tpu.vector_store %arg4[%c0_13, %c0_14, %c0_15], %36 {strides = array<i32>} : memref<1x1x128xf32, #tpu.memory_space<vmem>>, vector<1x1x128xf32>,
    %37 = arith.mulf %30, %30 : vector<32x128xf32>
    %cst_16 = arith.constant dense<0.000000e+00> : vector<128xf32>
    %38 = vector.multi_reduction <add>, %37, %cst_16 [0] : vector<32x128xf32> to vector<128xf32>
    %39 = vector.shape_cast %38 : vector<128xf32> to vector<1x128xf32>
    %c0_17 = arith.constant 0 : index
    %c0_18 = arith.constant 0 : index
    %c0_19 = arith.constant 0 : index
    %40 = vector.load %arg5[%c0_17, %c0_18, %c0_19] : memref<1x1x128xf32, #tpu.memory_space<vmem>>, vector<1x1x128xf32>
    %41 = vector.shape_cast %40 : vector<1x1x128xf32> to vector<1x128xf32>
    %42 = vector.shape_cast %39 : vector<1x128xf32> to vector<1x1x128xf32>
    tpu.vector_store %arg5[%c0_17, %c0_18, %c0_19], %42 {strides = array<i32>} : memref<1x1x128xf32, #tpu.memory_space<vmem>>, vector<1x1x128xf32>,
    return
  }
  func.func @transform_0(%arg0: i32) -> (i32, i32) {
    %c0_i32 = arith.constant 0 : i32
    %c0_i32_0 = arith.constant 0 : i32
    return %arg0, %c0_i32 : i32, i32
  }
  func.func @transform_1(%arg0: i32) -> (i32, i32) {
    %c0_i32 = arith.constant 0 : i32
    %c0_i32_0 = arith.constant 0 : i32
    %c0_i32_1 = arith.constant 0 : i32
    return %c0_i32, %c0_i32_0 : i32, i32
  }
  func.func @transform_2(%arg0: i32) -> (i32, i32) {
    %c0_i32 = arith.constant 0 : i32
    %c0_i32_0 = arith.constant 0 : i32
    return %arg0, %c0_i32 : i32, i32
  }
  func.func @transform_3(%arg0: i32) -> (i32, i32, i32) {
    %c0_i32 = arith.constant 0 : i32
    %c0_i32_0 = arith.constant 0 : i32
    %c0_i32_1 = arith.constant 0 : i32
    return %arg0, %c0_i32, %c0_i32_0 : i32, i32, i32
  }
  func.func @transform_4(%arg0: i32) -> (i32, i32, i32) {
    %c0_i32 = arith.constant 0 : i32
    %c0_i32_0 = arith.constant 0 : i32
    %c0_i32_1 = arith.constant 0 : i32
    return %arg0, %c0_i32, %c0_i32_0 : i32, i32, i32
  }
}

module attributes {stable_mosaic.version = 11 : i64} {
  func.func @_epilogue_kernel(%arg0: i32, %arg1: memref<32x128xf32, #tpu.memory_space<vmem>>, %arg2: memref<32x128xf32, #tpu.memory_space<vmem>>, %arg3: memref<1x1x128xf32, #tpu.memory_space<vmem>>, %arg4: memref<1x1x128xf32, #tpu.memory_space<vmem>>, %arg5: memref<1x128xf32, #tpu.memory_space<vmem>>, %arg6: memref<1x128xf32, #tpu.memory_space<vmem>>, %arg7: memref<32x128xf32, #tpu.memory_space<vmem>>) attributes {dimension_semantics = [#tpu.dimension_semantics<parallel>], iteration_bounds = array<i64: 1>, scalar_prefetch = 0 : i64, scratch_operands = 0 : i64, tpu.core_type = #tpu.core_type<tc>, window_params = [{transform_indices = @transform_0, window_bounds = array<i64: 32, 128>}, {transform_indices = @transform_1, window_bounds = array<i64: 32, 128>}, {pipeline_mode = #tpu.pipeline_mode<synchronous>, transform_indices = @transform_2, window_bounds = array<i64: 1, 1, 128>}, {pipeline_mode = #tpu.pipeline_mode<synchronous>, transform_indices = @transform_3, window_bounds = array<i64: 1, 1, 128>}, {pipeline_mode = #tpu.pipeline_mode<synchronous>, transform_indices = @transform_4, window_bounds = array<i64: 1, 128>}, {pipeline_mode = #tpu.pipeline_mode<synchronous>, transform_indices = @transform_5, window_bounds = array<i64: 1, 128>}, {transform_indices = @transform_6, window_bounds = array<i64: 32, 128>}]} {
    %c0 = arith.constant 0 : index
    %c0_0 = arith.constant 0 : index
    %c0_1 = arith.constant 0 : index
    %0 = vector.load %arg3[%c0, %c0_0, %c0_1] : memref<1x1x128xf32, #tpu.memory_space<vmem>>, vector<1x1x128xf32>
    %cst = arith.constant dense<0.000000e+00> : vector<1x128xf32>
    %1 = vector.multi_reduction <add>, %0, %cst [0] : vector<1x1x128xf32> to vector<1x128xf32>
    %c0_2 = arith.constant 0 : index
    %c0_3 = arith.constant 0 : index
    %c0_4 = arith.constant 0 : index
    %2 = vector.load %arg4[%c0_2, %c0_3, %c0_4] : memref<1x1x128xf32, #tpu.memory_space<vmem>>, vector<1x1x128xf32>
    %cst_5 = arith.constant dense<0.000000e+00> : vector<1x128xf32>
    %3 = vector.multi_reduction <add>, %2, %cst_5 [0] : vector<1x1x128xf32> to vector<1x128xf32>
    %4 = tpu.iota {dimensions = array<i32: 0>} : vector<128x128xi32>
    %c8_i32 = arith.constant 8 : i32
    %c0_i32 = arith.constant 0 : i32
    %5 = arith.cmpi eq, %c8_i32, %c0_i32 : i32
    %c1_i32 = arith.constant 1 : i32
    %6 = arith.select %5, %c1_i32, %c8_i32 : i32
    %7 = vector.broadcast %6 : i32 to vector<128x128xi32>
    %8 = arith.remsi %4, %7 : vector<128x128xi32>
    %c0_i32_6 = arith.constant 0 : i32
    %9 = vector.broadcast %c0_i32_6 : i32 to vector<128x128xi32>
    %10 = arith.cmpi ne, %8, %9 : vector<128x128xi32>
    %c0_i32_7 = arith.constant 0 : i32
    %11 = vector.broadcast %c0_i32_7 : i32 to vector<128x128xi32>
    %12 = arith.cmpi slt, %8, %11 : vector<128x128xi32>
    %c0_i32_8 = arith.constant 0 : i32
    %13 = arith.cmpi slt, %6, %c0_i32_8 : i32
    %14 = vector.broadcast %13 : i1 to vector<128x128xi1>
    %15 = vector.broadcast %14 : vector<128x128xi1> to vector<128x128xi1>
    %16 = arith.xori %12, %15 : vector<128x128xi1>
    %17 = arith.andi %16, %10 : vector<128x128xi1>
    %18 = vector.broadcast %6 : i32 to vector<128x128xi32>
    %19 = arith.addi %8, %18 : vector<128x128xi32>
    %20 = arith.select %17, %19, %8 : vector<128x128xi1>, vector<128x128xi32>
    %21 = tpu.iota {dimensions = array<i32: 1>} : vector<128x128xi32>
    %c8_i32_9 = arith.constant 8 : i32
    %c0_i32_10 = arith.constant 0 : i32
    %22 = arith.cmpi eq, %c8_i32_9, %c0_i32_10 : i32
    %c1_i32_11 = arith.constant 1 : i32
    %23 = arith.select %22, %c1_i32_11, %c8_i32_9 : i32
    %24 = vector.broadcast %23 : i32 to vector<128x128xi32>
    %25 = arith.remsi %21, %24 : vector<128x128xi32>
    %c0_i32_12 = arith.constant 0 : i32
    %26 = vector.broadcast %c0_i32_12 : i32 to vector<128x128xi32>
    %27 = arith.cmpi ne, %25, %26 : vector<128x128xi32>
    %c0_i32_13 = arith.constant 0 : i32
    %28 = vector.broadcast %c0_i32_13 : i32 to vector<128x128xi32>
    %29 = arith.cmpi slt, %25, %28 : vector<128x128xi32>
    %c0_i32_14 = arith.constant 0 : i32
    %30 = arith.cmpi slt, %23, %c0_i32_14 : i32
    %31 = vector.broadcast %30 : i1 to vector<128x128xi1>
    %32 = vector.broadcast %31 : vector<128x128xi1> to vector<128x128xi1>
    %33 = arith.xori %29, %32 : vector<128x128xi1>
    %34 = arith.andi %33, %27 : vector<128x128xi1>
    %35 = vector.broadcast %23 : i32 to vector<128x128xi32>
    %36 = arith.addi %25, %35 : vector<128x128xi32>
    %37 = arith.select %34, %36, %25 : vector<128x128xi1>, vector<128x128xi32>
    %38 = arith.cmpi eq, %20, %37 : vector<128x128xi32>
    %39 = arith.extui %38 : vector<128x128xi1> to vector<128x128xi32>
    %40 = arith.sitofp %39 : vector<128x128xi32> to vector<128x128xf32>
    %41 = vector.shape_cast %1 : vector<1x128xf32> to vector<1x128xf32>
    %42 = vector.broadcast %41 : vector<1x128xf32> to vector<8x128xf32>
    %43 = vector.shape_cast %3 : vector<1x128xf32> to vector<1x128xf32>
    %44 = vector.broadcast %43 : vector<1x128xf32> to vector<8x128xf32>
    %cst_15 = arith.constant dense<0.000000e+00> : vector<8x128xf32>
    %45 = tpu.matmul %42, %40, %cst_15 {dimension_numbers = #tpu.dot_dimension_numbers<[1], [0], [0], [1], [0, 0, 1, 1], [], []>} : vector<8x128xf32>, vector<128x128xf32>, vector<8x128xf32> -> vector<8x128xf32>
    %46 = vector.extract_strided_slice %45 {offsets = [0, 0], sizes = [1, 128], strides = [1, 1]} : vector<8x128xf32> to vector<1x128xf32>
    %cst_16 = arith.constant dense<0.000000e+00> : vector<8x128xf32>
    %47 = tpu.matmul %44, %40, %cst_16 {dimension_numbers = #tpu.dot_dimension_numbers<[1], [0], [0], [1], [0, 0, 1, 1], [], []>} : vector<8x128xf32>, vector<128x128xf32>, vector<8x128xf32> -> vector<8x128xf32>
    %48 = vector.extract_strided_slice %47 {offsets = [0, 0], sizes = [1, 128], strides = [1, 1]} : vector<8x128xf32> to vector<1x128xf32>
    %cst_17 = arith.constant 0.001953125 : f32
    %49 = vector.broadcast %cst_17 : f32 to vector<1x128xf32>
    %50 = arith.mulf %46, %49 : vector<1x128xf32>
    %cst_18 = arith.constant 0.001953125 : f32
    %51 = vector.broadcast %cst_18 : f32 to vector<1x128xf32>
    %52 = arith.mulf %48, %51 : vector<1x128xf32>
    %53 = arith.mulf %50, %50 : vector<1x128xf32>
    %54 = arith.subf %52, %53 : vector<1x128xf32>
    %cst_19 = arith.constant 9.99999974E-6 : f32
    %55 = vector.broadcast %cst_19 : f32 to vector<1x128xf32>
    %56 = arith.addf %54, %55 : vector<1x128xf32>
    %57 = math.rsqrt %56 : vector<1x128xf32>
    %c0_20 = arith.constant 0 : index
    %c0_21 = arith.constant 0 : index
    %58 = vector.load %arg5[%c0_20, %c0_21] : memref<1x128xf32, #tpu.memory_space<vmem>>, vector<1x128xf32>
    %59 = arith.mulf %58, %57 : vector<1x128xf32>
    %c0_22 = arith.constant 0 : index
    %c0_23 = arith.constant 0 : index
    %60 = vector.load %arg6[%c0_22, %c0_23] : memref<1x128xf32, #tpu.memory_space<vmem>>, vector<1x128xf32>
    %61 = arith.mulf %50, %59 : vector<1x128xf32>
    %62 = arith.subf %60, %61 : vector<1x128xf32>
    %c0_24 = arith.constant 0 : index
    %c0_25 = arith.constant 0 : index
    %63 = vector.load %arg1[%c0_24, %c0_25] : memref<32x128xf32, #tpu.memory_space<vmem>>, vector<32x128xf32>
    %c0_26 = arith.constant 0 : index
    %c0_27 = arith.constant 0 : index
    %64 = vector.load %arg2[%c0_26, %c0_27] : memref<32x128xf32, #tpu.memory_space<vmem>>, vector<32x128xf32>
    %65 = vector.broadcast %59 : vector<1x128xf32> to vector<32x128xf32>
    %66 = arith.mulf %64, %65 : vector<32x128xf32>
    %67 = arith.addf %63, %66 : vector<32x128xf32>
    %68 = vector.broadcast %62 : vector<1x128xf32> to vector<32x128xf32>
    %69 = arith.addf %67, %68 : vector<32x128xf32>
    %cst_28 = arith.constant 0.000000e+00 : f32
    %70 = vector.broadcast %cst_28 : f32 to vector<32x128xf32>
    %71 = arith.maximumf %69, %70 : vector<32x128xf32>
    %c0_29 = arith.constant 0 : index
    %c0_30 = arith.constant 0 : index
    %72 = vector.load %arg7[%c0_29, %c0_30] : memref<32x128xf32, #tpu.memory_space<vmem>>, vector<32x128xf32>
    tpu.vector_store %arg7[%c0_29, %c0_30], %71 {strides = array<i32>} : memref<32x128xf32, #tpu.memory_space<vmem>>, vector<32x128xf32>,
    return
  }
  func.func @transform_0(%arg0: i32) -> (i32, i32) {
    %c0_i32 = arith.constant 0 : i32
    %c0_i32_0 = arith.constant 0 : i32
    return %arg0, %c0_i32 : i32, i32
  }
  func.func @transform_1(%arg0: i32) -> (i32, i32) {
    %c0_i32 = arith.constant 0 : i32
    %c0_i32_0 = arith.constant 0 : i32
    return %arg0, %c0_i32 : i32, i32
  }
  func.func @transform_2(%arg0: i32) -> (i32, i32, i32) {
    %c0_i32 = arith.constant 0 : i32
    %c0_i32_0 = arith.constant 0 : i32
    %c0_i32_1 = arith.constant 0 : i32
    %c0_i32_2 = arith.constant 0 : i32
    return %c0_i32, %c0_i32_0, %c0_i32_1 : i32, i32, i32
  }
  func.func @transform_3(%arg0: i32) -> (i32, i32, i32) {
    %c0_i32 = arith.constant 0 : i32
    %c0_i32_0 = arith.constant 0 : i32
    %c0_i32_1 = arith.constant 0 : i32
    %c0_i32_2 = arith.constant 0 : i32
    return %c0_i32, %c0_i32_0, %c0_i32_1 : i32, i32, i32
  }
  func.func @transform_4(%arg0: i32) -> (i32, i32) {
    %c0_i32 = arith.constant 0 : i32
    %c0_i32_0 = arith.constant 0 : i32
    %c0_i32_1 = arith.constant 0 : i32
    return %c0_i32, %c0_i32_0 : i32, i32
  }
  func.func @transform_5(%arg0: i32) -> (i32, i32) {
    %c0_i32 = arith.constant 0 : i32
    %c0_i32_0 = arith.constant 0 : i32
    %c0_i32_1 = arith.constant 0 : i32
    return %c0_i32, %c0_i32_0 : i32, i32
  }
  func.func @transform_6(%arg0: i32) -> (i32, i32) {
    %c0_i32 = arith.constant 0 : i32
    %c0_i32_0 = arith.constant 0 : i32
    return %arg0, %c0_i32 : i32, i32
  }
}

module attributes {stable_mosaic.version = 11 : i64} {
  func.func @_conv_b_kernel(%arg0: i32, %arg1: memref<32x128xf32, #tpu.memory_space<vmem>>, %arg2: memref<1x1x128xf32, #tpu.memory_space<vmem>>, %arg3: memref<1x1x128xf32, #tpu.memory_space<vmem>>, %arg4: memref<1x128xf32, #tpu.memory_space<vmem>>, %arg5: memref<1x128xf32, #tpu.memory_space<vmem>>, %arg6: memref<384x128xf32, #tpu.memory_space<vmem>>, %arg7: memref<32x128xf32, #tpu.memory_space<vmem>>, %arg8: memref<1x1x128xf32, #tpu.memory_space<vmem>>, %arg9: memref<1x1x128xf32, #tpu.memory_space<vmem>>) attributes {dimension_semantics = [#tpu.dimension_semantics<parallel>], iteration_bounds = array<i64: 1>, scalar_prefetch = 0 : i64, scratch_operands = 0 : i64, tpu.core_type = #tpu.core_type<tc>, window_params = [{transform_indices = @transform_0, window_bounds = array<i64: 32, 128>}, {pipeline_mode = #tpu.pipeline_mode<synchronous>, transform_indices = @transform_1, window_bounds = array<i64: 1, 1, 128>}, {pipeline_mode = #tpu.pipeline_mode<synchronous>, transform_indices = @transform_2, window_bounds = array<i64: 1, 1, 128>}, {pipeline_mode = #tpu.pipeline_mode<synchronous>, transform_indices = @transform_3, window_bounds = array<i64: 1, 128>}, {pipeline_mode = #tpu.pipeline_mode<synchronous>, transform_indices = @transform_4, window_bounds = array<i64: 1, 128>}, {pipeline_mode = #tpu.pipeline_mode<synchronous>, transform_indices = @transform_5, window_bounds = array<i64: 384, 128>}, {transform_indices = @transform_6, window_bounds = array<i64: 32, 128>}, {transform_indices = @transform_7, window_bounds = array<i64: 1, 1, 128>}, {transform_indices = @transform_8, window_bounds = array<i64: 1, 1, 128>}]} {
    %c0 = arith.constant 0 : index
    %c0_0 = arith.constant 0 : index
    %c0_1 = arith.constant 0 : index
    %0 = vector.load %arg2[%c0, %c0_0, %c0_1] : memref<1x1x128xf32, #tpu.memory_space<vmem>>, vector<1x1x128xf32>
    %cst = arith.constant dense<0.000000e+00> : vector<1x128xf32>
    %1 = vector.multi_reduction <add>, %0, %cst [0] : vector<1x1x128xf32> to vector<1x128xf32>
    %c0_2 = arith.constant 0 : index
    %c0_3 = arith.constant 0 : index
    %c0_4 = arith.constant 0 : index
    %2 = vector.load %arg3[%c0_2, %c0_3, %c0_4] : memref<1x1x128xf32, #tpu.memory_space<vmem>>, vector<1x1x128xf32>
    %cst_5 = arith.constant dense<0.000000e+00> : vector<1x128xf32>
    %3 = vector.multi_reduction <add>, %2, %cst_5 [0] : vector<1x1x128xf32> to vector<1x128xf32>
    %4 = tpu.iota {dimensions = array<i32: 0>} : vector<128x128xi32>
    %c8_i32 = arith.constant 8 : i32
    %c0_i32 = arith.constant 0 : i32
    %5 = arith.cmpi eq, %c8_i32, %c0_i32 : i32
    %c1_i32 = arith.constant 1 : i32
    %6 = arith.select %5, %c1_i32, %c8_i32 : i32
    %7 = vector.broadcast %6 : i32 to vector<128x128xi32>
    %8 = arith.remsi %4, %7 : vector<128x128xi32>
    %c0_i32_6 = arith.constant 0 : i32
    %9 = vector.broadcast %c0_i32_6 : i32 to vector<128x128xi32>
    %10 = arith.cmpi ne, %8, %9 : vector<128x128xi32>
    %c0_i32_7 = arith.constant 0 : i32
    %11 = vector.broadcast %c0_i32_7 : i32 to vector<128x128xi32>
    %12 = arith.cmpi slt, %8, %11 : vector<128x128xi32>
    %c0_i32_8 = arith.constant 0 : i32
    %13 = arith.cmpi slt, %6, %c0_i32_8 : i32
    %14 = vector.broadcast %13 : i1 to vector<128x128xi1>
    %15 = vector.broadcast %14 : vector<128x128xi1> to vector<128x128xi1>
    %16 = arith.xori %12, %15 : vector<128x128xi1>
    %17 = arith.andi %16, %10 : vector<128x128xi1>
    %18 = vector.broadcast %6 : i32 to vector<128x128xi32>
    %19 = arith.addi %8, %18 : vector<128x128xi32>
    %20 = arith.select %17, %19, %8 : vector<128x128xi1>, vector<128x128xi32>
    %21 = tpu.iota {dimensions = array<i32: 1>} : vector<128x128xi32>
    %c8_i32_9 = arith.constant 8 : i32
    %c0_i32_10 = arith.constant 0 : i32
    %22 = arith.cmpi eq, %c8_i32_9, %c0_i32_10 : i32
    %c1_i32_11 = arith.constant 1 : i32
    %23 = arith.select %22, %c1_i32_11, %c8_i32_9 : i32
    %24 = vector.broadcast %23 : i32 to vector<128x128xi32>
    %25 = arith.remsi %21, %24 : vector<128x128xi32>
    %c0_i32_12 = arith.constant 0 : i32
    %26 = vector.broadcast %c0_i32_12 : i32 to vector<128x128xi32>
    %27 = arith.cmpi ne, %25, %26 : vector<128x128xi32>
    %c0_i32_13 = arith.constant 0 : i32
    %28 = vector.broadcast %c0_i32_13 : i32 to vector<128x128xi32>
    %29 = arith.cmpi slt, %25, %28 : vector<128x128xi32>
    %c0_i32_14 = arith.constant 0 : i32
    %30 = arith.cmpi slt, %23, %c0_i32_14 : i32
    %31 = vector.broadcast %30 : i1 to vector<128x128xi1>
    %32 = vector.broadcast %31 : vector<128x128xi1> to vector<128x128xi1>
    %33 = arith.xori %29, %32 : vector<128x128xi1>
    %34 = arith.andi %33, %27 : vector<128x128xi1>
    %35 = vector.broadcast %23 : i32 to vector<128x128xi32>
    %36 = arith.addi %25, %35 : vector<128x128xi32>
    %37 = arith.select %34, %36, %25 : vector<128x128xi1>, vector<128x128xi32>
    %38 = arith.cmpi eq, %20, %37 : vector<128x128xi32>
    %39 = arith.extui %38 : vector<128x128xi1> to vector<128x128xi32>
    %40 = arith.sitofp %39 : vector<128x128xi32> to vector<128x128xf32>
    %41 = vector.shape_cast %1 : vector<1x128xf32> to vector<1x128xf32>
    %42 = vector.broadcast %41 : vector<1x128xf32> to vector<8x128xf32>
    %43 = vector.shape_cast %3 : vector<1x128xf32> to vector<1x128xf32>
    %44 = vector.broadcast %43 : vector<1x128xf32> to vector<8x128xf32>
    %cst_15 = arith.constant dense<0.000000e+00> : vector<8x128xf32>
    %45 = tpu.matmul %42, %40, %cst_15 {dimension_numbers = #tpu.dot_dimension_numbers<[1], [0], [0], [1], [0, 0, 1, 1], [], []>} : vector<8x128xf32>, vector<128x128xf32>, vector<8x128xf32> -> vector<8x128xf32>
    %46 = vector.extract_strided_slice %45 {offsets = [0, 0], sizes = [1, 128], strides = [1, 1]} : vector<8x128xf32> to vector<1x128xf32>
    %cst_16 = arith.constant dense<0.000000e+00> : vector<8x128xf32>
    %47 = tpu.matmul %44, %40, %cst_16 {dimension_numbers = #tpu.dot_dimension_numbers<[1], [0], [0], [1], [0, 0, 1, 1], [], []>} : vector<8x128xf32>, vector<128x128xf32>, vector<8x128xf32> -> vector<8x128xf32>
    %48 = vector.extract_strided_slice %47 {offsets = [0, 0], sizes = [1, 128], strides = [1, 1]} : vector<8x128xf32> to vector<1x128xf32>
    %cst_17 = arith.constant 0.001953125 : f32
    %49 = vector.broadcast %cst_17 : f32 to vector<1x128xf32>
    %50 = arith.mulf %46, %49 : vector<1x128xf32>
    %cst_18 = arith.constant 0.001953125 : f32
    %51 = vector.broadcast %cst_18 : f32 to vector<1x128xf32>
    %52 = arith.mulf %48, %51 : vector<1x128xf32>
    %53 = arith.mulf %50, %50 : vector<1x128xf32>
    %54 = arith.subf %52, %53 : vector<1x128xf32>
    %cst_19 = arith.constant 9.99999974E-6 : f32
    %55 = vector.broadcast %cst_19 : f32 to vector<1x128xf32>
    %56 = arith.addf %54, %55 : vector<1x128xf32>
    %57 = math.rsqrt %56 : vector<1x128xf32>
    %c0_20 = arith.constant 0 : index
    %c0_21 = arith.constant 0 : index
    %58 = vector.load %arg4[%c0_20, %c0_21] : memref<1x128xf32, #tpu.memory_space<vmem>>, vector<1x128xf32>
    %59 = arith.mulf %58, %57 : vector<1x128xf32>
    %c0_22 = arith.constant 0 : index
    %c0_23 = arith.constant 0 : index
    %60 = vector.load %arg5[%c0_22, %c0_23] : memref<1x128xf32, #tpu.memory_space<vmem>>, vector<1x128xf32>
    %61 = arith.mulf %50, %59 : vector<1x128xf32>
    %62 = arith.subf %60, %61 : vector<1x128xf32>
    %c0_24 = arith.constant 0 : index
    %c0_25 = arith.constant 0 : index
    %63 = vector.load %arg1[%c0_24, %c0_25] : memref<32x128xf32, #tpu.memory_space<vmem>>, vector<32x128xf32>
    %64 = vector.broadcast %59 : vector<1x128xf32> to vector<32x128xf32>
    %65 = arith.mulf %63, %64 : vector<32x128xf32>
    %66 = vector.broadcast %62 : vector<1x128xf32> to vector<32x128xf32>
    %67 = arith.addf %65, %66 : vector<32x128xf32>
    %cst_26 = arith.constant 0.000000e+00 : f32
    %68 = vector.broadcast %cst_26 : f32 to vector<32x128xf32>
    %69 = arith.maximumf %67, %68 : vector<32x128xf32>
    %70 = tpu.iota {dimensions = array<i32: 0>} : vector<32x128xi32>
    %c16_i32 = arith.constant 16 : i32
    %c0_i32_27 = arith.constant 0 : i32
    %71 = arith.cmpi eq, %c16_i32, %c0_i32_27 : i32
    %c1_i32_28 = arith.constant 1 : i32
    %72 = arith.select %71, %c1_i32_28, %c16_i32 : i32
    %73 = vector.broadcast %72 : i32 to vector<32x128xi32>
    %74 = arith.remsi %70, %73 : vector<32x128xi32>
    %c0_i32_29 = arith.constant 0 : i32
    %75 = vector.broadcast %c0_i32_29 : i32 to vector<32x128xi32>
    %76 = arith.cmpi ne, %74, %75 : vector<32x128xi32>
    %c0_i32_30 = arith.constant 0 : i32
    %77 = vector.broadcast %c0_i32_30 : i32 to vector<32x128xi32>
    %78 = arith.cmpi slt, %74, %77 : vector<32x128xi32>
    %c0_i32_31 = arith.constant 0 : i32
    %79 = arith.cmpi slt, %72, %c0_i32_31 : i32
    %80 = vector.broadcast %79 : i1 to vector<32x128xi1>
    %81 = vector.broadcast %80 : vector<32x128xi1> to vector<32x128xi1>
    %82 = arith.xori %78, %81 : vector<32x128xi1>
    %83 = arith.andi %82, %76 : vector<32x128xi1>
    %84 = vector.broadcast %72 : i32 to vector<32x128xi32>
    %85 = arith.addi %74, %84 : vector<32x128xi32>
    %86 = arith.select %83, %85, %74 : vector<32x128xi1>, vector<32x128xi32>
    %c0_i32_32 = arith.constant 0 : i32
    %87 = vector.broadcast %c0_i32_32 : i32 to vector<32x128xi32>
    %88 = arith.cmpi eq, %86, %87 : vector<32x128xi32>
    %c1_i32_33 = arith.constant 1 : i32
    %89 = tpu.dynamic_rotate %69 by %c1_i32_33 dim 0 : vector<32x128xf32>, i32 -> vector<32x128xf32>
    %cst_34 = arith.constant 0.000000e+00 : f32
    %90 = vector.broadcast %cst_34 : f32 to vector<32x128xf32>
    %91 = arith.select %88, %90, %89 : vector<32x128xi1>, vector<32x128xf32>
    %c15_i32 = arith.constant 15 : i32
    %92 = vector.broadcast %c15_i32 : i32 to vector<32x128xi32>
    %93 = arith.cmpi eq, %86, %92 : vector<32x128xi32>
    %c31_i32 = arith.constant 31 : i32
    %94 = tpu.dynamic_rotate %69 by %c31_i32 dim 0 : vector<32x128xf32>, i32 -> vector<32x128xf32>
    %cst_35 = arith.constant 0.000000e+00 : f32
    %95 = vector.broadcast %cst_35 : f32 to vector<32x128xf32>
    %96 = arith.select %93, %95, %94 : vector<32x128xi1>, vector<32x128xf32>
    %97 = tpu.concatenate %91, %69, %96 in 1 : vector<32x128xf32>, vector<32x128xf32>, vector<32x128xf32> -> vector<32x384xf32>
    %c0_36 = arith.constant 0 : index
    %c0_37 = arith.constant 0 : index
    %98 = vector.load %arg6[%c0_36, %c0_37] : memref<384x128xf32, #tpu.memory_space<vmem>>, vector<384x128xf32>
    %cst_38 = arith.constant dense<0.000000e+00> : vector<32x128xf32>
    %99 = tpu.matmul %97, %98, %cst_38 {dimension_numbers = #tpu.dot_dimension_numbers<[1], [0], [0], [1], [0, 0, 1, 1], [], []>} : vector<32x384xf32>, vector<384x128xf32>, vector<32x128xf32> -> vector<32x128xf32>
    %c0_39 = arith.constant 0 : index
    %c0_40 = arith.constant 0 : index
    %100 = vector.load %arg7[%c0_39, %c0_40] : memref<32x128xf32, #tpu.memory_space<vmem>>, vector<32x128xf32>
    tpu.vector_store %arg7[%c0_39, %c0_40], %99 {strides = array<i32>} : memref<32x128xf32, #tpu.memory_space<vmem>>, vector<32x128xf32>,
    %cst_41 = arith.constant dense<0.000000e+00> : vector<128xf32>
    %101 = vector.multi_reduction <add>, %99, %cst_41 [0] : vector<32x128xf32> to vector<128xf32>
    %102 = vector.shape_cast %101 : vector<128xf32> to vector<1x128xf32>
    %c0_42 = arith.constant 0 : index
    %c0_43 = arith.constant 0 : index
    %c0_44 = arith.constant 0 : index
    %103 = vector.load %arg8[%c0_42, %c0_43, %c0_44] : memref<1x1x128xf32, #tpu.memory_space<vmem>>, vector<1x1x128xf32>
    %104 = vector.shape_cast %103 : vector<1x1x128xf32> to vector<1x128xf32>
    %105 = vector.shape_cast %102 : vector<1x128xf32> to vector<1x1x128xf32>
    tpu.vector_store %arg8[%c0_42, %c0_43, %c0_44], %105 {strides = array<i32>} : memref<1x1x128xf32, #tpu.memory_space<vmem>>, vector<1x1x128xf32>,
    %106 = arith.mulf %99, %99 : vector<32x128xf32>
    %cst_45 = arith.constant dense<0.000000e+00> : vector<128xf32>
    %107 = vector.multi_reduction <add>, %106, %cst_45 [0] : vector<32x128xf32> to vector<128xf32>
    %108 = vector.shape_cast %107 : vector<128xf32> to vector<1x128xf32>
    %c0_46 = arith.constant 0 : index
    %c0_47 = arith.constant 0 : index
    %c0_48 = arith.constant 0 : index
    %109 = vector.load %arg9[%c0_46, %c0_47, %c0_48] : memref<1x1x128xf32, #tpu.memory_space<vmem>>, vector<1x1x128xf32>
    %110 = vector.shape_cast %109 : vector<1x1x128xf32> to vector<1x128xf32>
    %111 = vector.shape_cast %108 : vector<1x128xf32> to vector<1x1x128xf32>
    tpu.vector_store %arg9[%c0_46, %c0_47, %c0_48], %111 {strides = array<i32>} : memref<1x1x128xf32, #tpu.memory_space<vmem>>, vector<1x1x128xf32>,
    return
  }
  func.func @transform_0(%arg0: i32) -> (i32, i32) {
    %c0_i32 = arith.constant 0 : i32
    %c0_i32_0 = arith.constant 0 : i32
    return %arg0, %c0_i32 : i32, i32
  }
  func.func @transform_1(%arg0: i32) -> (i32, i32, i32) {
    %c0_i32 = arith.constant 0 : i32
    %c0_i32_0 = arith.constant 0 : i32
    %c0_i32_1 = arith.constant 0 : i32
    %c0_i32_2 = arith.constant 0 : i32
    return %c0_i32, %c0_i32_0, %c0_i32_1 : i32, i32, i32
  }
  func.func @transform_2(%arg0: i32) -> (i32, i32, i32) {
    %c0_i32 = arith.constant 0 : i32
    %c0_i32_0 = arith.constant 0 : i32
    %c0_i32_1 = arith.constant 0 : i32
    %c0_i32_2 = arith.constant 0 : i32
    return %c0_i32, %c0_i32_0, %c0_i32_1 : i32, i32, i32
  }
  func.func @transform_3(%arg0: i32) -> (i32, i32) {
    %c0_i32 = arith.constant 0 : i32
    %c0_i32_0 = arith.constant 0 : i32
    %c0_i32_1 = arith.constant 0 : i32
    return %c0_i32, %c0_i32_0 : i32, i32
  }
  func.func @transform_4(%arg0: i32) -> (i32, i32) {
    %c0_i32 = arith.constant 0 : i32
    %c0_i32_0 = arith.constant 0 : i32
    %c0_i32_1 = arith.constant 0 : i32
    return %c0_i32, %c0_i32_0 : i32, i32
  }
  func.func @transform_5(%arg0: i32) -> (i32, i32) {
    %c0_i32 = arith.constant 0 : i32
    %c0_i32_0 = arith.constant 0 : i32
    %c0_i32_1 = arith.constant 0 : i32
    return %c0_i32, %c0_i32_0 : i32, i32
  }
  func.func @transform_6(%arg0: i32) -> (i32, i32) {
    %c0_i32 = arith.constant 0 : i32
    %c0_i32_0 = arith.constant 0 : i32
    return %arg0, %c0_i32 : i32, i32
  }
  func.func @transform_7(%arg0: i32) -> (i32, i32, i32) {
    %c0_i32 = arith.constant 0 : i32
    %c0_i32_0 = arith.constant 0 : i32
    %c0_i32_1 = arith.constant 0 : i32
    return %arg0, %c0_i32, %c0_i32_0 : i32, i32, i32
  }
  func.func @transform_8(%arg0: i32) -> (i32, i32, i32) {
    %c0_i32 = arith.constant 0 : i32
    %c0_i32_0 = arith.constant 0 : i32
    %c0_i32_1 = arith.constant 0 : i32
    return %arg0, %c0_i32, %c0_i32_0 : i32, i32, i32
  }
}

</mosaic_0001>

<bundles_post_ra>
// kernel: resnet_basicblock_rows.3
= control target key start
LH: loop header
LB: loop body
LE: loop exit
PB: predicated region body
PF: predicated region fallthrough
CT: control target
= control target key end

     0   :  { %v18_v32 = vlaneseq  ;;  %s541_s1 = inlined_call_operand.vmem [shape: f32[384,128], index: 1, kind: input, shape index: {}]   ;;  %s542_s0 = inlined_call_operand.vmem [shape: f32[32,128], index: 0, kind: input, shape index: {}]   ;;  %s543_s2 = inlined_call_operand.vmem [shape: f32[32,128], index: 2, kind: output, shape index: {0}]   ;;  %s544_s3 = inlined_call_operand.vmem [shape: f32[1,1,128], index: 3, kind: output, shape index: {1}]   ;;  %s545_s4 = inlined_call_operand.vmem [shape: f32[1,1,128], index: 4, kind: output, shape index: {2}]  }
   0x1   :  { %v152_v0 = vld [vmem:[%s541_s1 + $0x178] sm:$0xff]  ;;  %v151_v1 = vld [vmem:[%s541_s1 + $0x170] sm:$0xff]  ;;  %v150_v5 = vld [vmem:[%s541_s1 + $0x168] sm:$0xff] }
   0x2   :  { %v120_v2 = vld [vmem:[%s541_s1 + $0x78] sm:$0xff]  ;;  %211 = vmatpush.msra.mxu2 %v152_v0  ;;  %v119_v4 = vld [vmem:[%s541_s1 + $0x70] sm:$0xff]  ;;  %v118_v7 = vld [vmem:[%s541_s1 + $0x68] sm:$0xff]  ;;  %v455_v41 = vshrl.u32 %v18_v32, 7 }
   0x3   :  { %153 = vmatpush.msra.mxu0 %v120_v2  ;;  %v136_v3 = vld [vmem:[%s541_s1 + $0xf8] sm:$0xff]  ;;  %292 = vmatpush.msra.mxu3 %v120_v2  ;;  %v135_v6 = vld [vmem:[%s541_s1 + $0xf0] sm:$0xff]  ;;  %v134_v8 = vld [vmem:[%s541_s1 + $0xe8] sm:$0xff] }
   0x4   :  { %182 = vmatpush.msra.mxu1 %v136_v3  ;;  %212 = vmatpush.msra.mxu2 %v151_v1  ;;  %v149_v9 = vld [vmem:[%s541_s1 + $0x160] sm:$0xff]  ;;  %v148_v12 = vld [vmem:[%s541_s1 + $0x158] sm:$0xff]  ;;  %v147_v15 = vld [vmem:[%s541_s1 + $0x150] sm:$0xff]  ;;  %vm96_vm0 = vcmp.lt.s32.totalorder %v455_v41, 7  ;;  %v27_v51 = vand.u32 15, %v455_v41  ;;  %vm79_vm1 = vcmp.lt.s32.totalorder %v455_v41, 1 }
   0x5   :  { %154 = vmatpush.msra.mxu0 %v119_v4  ;;  %293 = vmatpush.msra.mxu3 %v119_v4  ;;  %v117_v10 = vld [vmem:[%s541_s1 + $0x60] sm:$0xff]  ;;  %v116_v13 = vld [vmem:[%s541_s1 + $0x58] sm:$0xff]  ;;  %v115_v16 = vld [vmem:[%s541_s1 + $0x50] sm:$0xff]  ;;  %v20_v60 = vadd.s32 8, %v455_v41  ;;  %v21_v0 = vadd.s32 16, %v455_v41 }
   0x6   :  { %183 = vmatpush.msra.mxu1 %v135_v6  ;;  %213 = vmatpush.msra.mxu2 %v150_v5  ;;  %v133_v11 = vld [vmem:[%s541_s1 + $0xe0] sm:$0xff]  ;;  %v132_v14 = vld [vmem:[%s541_s1 + $0xd8] sm:$0xff]  ;;  %v131_v17 = vld [vmem:[%s541_s1 + $0xd0] sm:$0xff]  ;;  %vm288_vm2 = vcmp.ne.s32.totalorder %v27_v51, 0 }
   0x7   :  { %155 = vmatpush.msra.mxu0 %v118_v7  ;;  %294 = vmatpush.msra.mxu3 %v118_v7  ;;  %v146_v18 = vld [vmem:[%s541_s1 + $0x148] sm:$0xff]  ;;  %v145_v21 = vld [vmem:[%s541_s1 + $0x140] sm:$0xff]  ;;  %v144_v24 = vld [vmem:[%s541_s1 + $0x138] sm:$0xff]  ;;  %v34_v1 = vand.u32 15, %v20_v60  ;;  %v41_v3 = vand.u32 15, %v21_v0 }
   0x8   :  { %184 = vmatpush.msra.mxu1 %v134_v8  ;;  %214 = vmatpush.msra.mxu2 %v149_v9  ;;  %v114_v19 = vld [vmem:[%s541_s1 + $0x48] sm:$0xff]  ;;  %v113_v22 = vld [vmem:[%s541_s1 + $0x40] sm:$0xff]  ;;  %v112_v25 = vld [vmem:[%s541_s1 + $0x38] sm:$0xff]  ;;  %v22_v9 = vadd.s32 24, %v455_v41 }
   0x9   :  { %156 = vmatpush.msra.mxu0 %v117_v10  ;;  %295 = vmatpush.msra.mxu3 %v117_v10  ;;  %v130_v20 = vld [vmem:[%s541_s1 + $0xc8] sm:$0xff]  ;;  %v129_v23 = vld [vmem:[%s541_s1 + $0xc0] sm:$0xff]  ;;  %v128_v26 = vld [vmem:[%s541_s1 + $0xb8] sm:$0xff]  ;;  %vm290_vm3 = vcmp.ne.s32.totalorder %v34_v1, 15  ;;  %vm289_vm4 = vcmp.ne.s32.totalorder %v41_v3, 0 }
   0xa   :  { %185 = vmatpush.msra.mxu1 %v133_v11  ;;  %215 = vmatpush.msra.mxu2 %v148_v12  ;;  %v143_v27 = vld [vmem:[%s541_s1 + $0x130] sm:$0xff]  ;;  %v142_v30 = vld [vmem:[%s541_s1 + $0x128] sm:$0xff]  ;;  %v141_v34 = vld [vmem:[%s541_s1 + $0x120] sm:$0xff]  ;;  %v48_v11 = vand.u32 15, %v22_v9 }
   0xb   :  { %157 = vmatpush.msra.mxu0 %v116_v13  ;;  %296 = vmatpush.msra.mxu3 %v116_v13  ;;  %v111_v28 = vld [vmem:[%s541_s1 + $0x30] sm:$0xff]  ;;  %v110_v31 = vld [vmem:[%s541_s1 + $0x28] sm:$0xff]  ;;  %v109_v35 = vld [vmem:[%s541_s1 + $0x20] sm:$0xff] }
   0xc   :  { %186 = vmatpush.msra.mxu1 %v132_v14  ;;  %216 = vmatpush.msra.mxu2 %v147_v15  ;;  %v127_v29 = vld [vmem:[%s541_s1 + $0xb0] sm:$0xff]  ;;  %v126_v33 = vld [vmem:[%s541_s1 + $0xa8] sm:$0xff]  ;;  %v140_v36 = vld [vmem:[%s541_s1 + $0x118] sm:$0xff]  ;;  %vm291_vm5 = vcmp.ne.s32.totalorder %v48_v11, 15 }
   0xd   :  { %158 = vmatpush.msra.mxu0 %v115_v16  ;;  %297 = vmatpush.msra.mxu3 %v115_v16  ;;  %v125_v37 = vld [vmem:[%s541_s1 + $0xa0] sm:$0xff]  ;;  %v108_v38 = vld [vmem:[%s541_s1 + $0x18] sm:$0xff]  ;;  %v15_v40 = vld [vmem:[%s542_s0 + $0x8] sm:$0xff] }
   0xe   :  { %187 = vmatpush.msra.mxu1 %v131_v17  ;;  %217 = vmatpush.msra.mxu2 %v146_v18  ;;  %v450_v39 = vld [vmem:[%s542_s0] sm:$0xff]  ;;  %v124_v42 = vld [vmem:[%s541_s1 + $0x98] sm:$0xff]  ;;  %v139_v44 = vld [vmem:[%s541_s1 + $0x110] sm:$0xff]  ;;  %v93_v48 = vrot.slane %v15_v40, 1  ;;  %v76_v57 = vrot.slane %v15_v40, 7 }
   0xf   :  { %159 = vmatpush.msra.mxu0 %v114_v19  ;;  %298 = vmatpush.msra.mxu3 %v114_v19  ;;  %v463_v43 = vld [vmem:[%s542_s0 + $0x18] sm:$0xff]  ;;  %v107_v45 = vld [vmem:[%s541_s1 + $0x10] sm:$0xff]  ;;  %v92_v47 = vrot.slane %v450_v39, 1  ;;  %v138_v49 = vld [vmem:[%s541_s1 + $0x108] sm:$0xff]  ;;  %v75_v52 = vrot.slane %v450_v39, 7 }
  0x10   :  { %188 = vmatpush.msra.mxu1 %v130_v20  ;;  %218 = vmatpush.msra.mxu2 %v145_v21  ;;  %v123_v46 = vld [vmem:[%s541_s1 + $0x90] sm:$0xff]  ;;  %v106_v50 = vld [vmem:[%s541_s1 + $0x8] sm:$0xff]  ;;  %v78_v53 = vrot.slane %v463_v43, 7  ;;  %v137_v55 = vld [vmem:[%s541_s1 + $0x100] sm:$0xff]  ;;  %v95_v7 = vrot.slane %v463_v43, 1 }
  0x11   :  { %160 = vmatpush.msra.mxu0 %v113_v22  ;;  %299 = vmatpush.msra.mxu3 %v113_v22  ;;  %v122_v54 = vld [vmem:[%s541_s1 + $0x88] sm:$0xff]  ;;  %v105_v56 = vld [vmem:[%s541_s1] sm:$0xff]  ;;  %v99_v58 = vsel %vm96_vm0, %v92_v47, %v93_v48  ;;  %v16_v62 = vld [vmem:[%s542_s0 + $0x10] sm:$0xff]  ;;  %v82_v63 = vsel %vm79_vm1, %v75_v52, %v76_v57 }
  0x12   :  { %189 = vmatpush.msra.mxu1 %v129_v23  ;;  %219 = vmatpush.msra.mxu2 %v144_v24  ;;  %v121_v59 = vld [vmem:[%s541_s1 + $0x80] sm:$0xff]  ;;  %v83_v61 = vsel %vm79_vm1, %v78_v53, %v75_v52  ;;  %v94_v2 = vrot.slane %v16_v62, 1  ;;  %v77_v4 = vrot.slane %v16_v62, 7  ;;  %v100_v12 = vsel %vm96_vm0, %v95_v7, %v92_v47 }
  0x13   :  { %161 = vmatpush.msra.mxu0 %v112_v25  ;;  %300 = vmatpush.msra.mxu3 %v112_v25 }
  0x14   :  { %190 = vmatpush.msra.mxu1 %v128_v26  ;;  %220 = vmatpush.msra.mxu2 %v143_v27  ;;  %v98_v5 = vsel %vm96_vm0, %v93_v48, %v94_v2  ;;  %v81_v6 = vsel %vm79_vm1, %v76_v57, %v77_v4  ;;  %v97_v8 = vsel %vm96_vm0, %v94_v2, %v95_v7 }
  0x15   :  { %162 = vmatpush.msra.mxu0 %v111_v28  ;;  %301 = vmatpush.msra.mxu3 %v111_v28  ;;  %v80_v10 = vsel %vm79_vm1, %v77_v4, %v78_v53 }
  0x16   :  { %191 = vmatpush.msra.mxu1 %v127_v29  ;;  %221 = vmatpush.msra.mxu2 %v142_v30 }
  0x17   :  { %163 = vmatpush.msra.mxu0 %v110_v31  ;;  %302 = vmatpush.msra.mxu3 %v110_v31 }
  0x18   :  { %192 = vmatpush.msra.mxu1 %v126_v33  ;;  %222 = vmatpush.msra.mxu2 %v141_v34 }
  0x19   :  { %164 = vmatpush.msra.mxu0 %v109_v35  ;;  %303 = vmatpush.msra.mxu3 %v109_v35 }
  0x1a   :  { %193 = vmatpush.msra.mxu1 %v125_v37  ;;  %223 = vmatpush.msra.mxu2 %v140_v36 }
  0x1b   :  { %165 = vmatpush.msra.mxu0 %v108_v38  ;;  %304 = vmatpush.msra.mxu3 %v108_v38 }
  0x1c   :  { %194 = vmatpush.msra.mxu1 %v124_v42  ;;  %224 = vmatpush.msra.mxu2 %v139_v44 }
  0x1d   :  { %166 = vmatpush.msra.mxu0 %v107_v45  ;;  %305 = vmatpush.msra.mxu3 %v107_v45 }
  0x1e   :  { %195 = vmatpush.msra.mxu1 %v123_v46  ;;  %225 = vmatpush.msra.mxu2 %v138_v49 }
  0x1f   :  { %167 = vmatpush.msra.mxu0 %v106_v50  ;;  %306 = vmatpush.msra.mxu3 %v106_v50 }
  0x20   :  { %196 = vmatpush.msra.mxu1 %v122_v54  ;;  %226 = vmatpush.msra.mxu2 %v137_v55 }
  0x21   :  { %168 = vmatpush.msra.mxu0 %v105_v56  ;;  %227 = vmatmul.f32.vlgmr.msra.gmra.mxu2 %v99_v58 }
  0x22   :  { %197 = vmatpush.msra.mxu1 %v121_v59  ;;  %281 = vmatmul.msk.f32.vlgmr.msra.gmra.mxu0 %vm288_vm2, %v83_v61 }
  0x23   :  { %198 = vmatmul.f32.vlgmr.msra.gmra.mxu1 %v450_v39  ;;  %307 = vmatpush.msra.mxu3 %v105_v56 }
  0x24   :  { %172 = vmatmul.f32.vlgmr.msra.gmra.mxu3 %v82_v63 }
  0x29   :  { %285 = vmatmul.msk.f32.gmra.mxu2 %vm290_vm3, %v98_v5 }
  0x2b   :  { %201 = vmatmul.f32.gmra.mxu1 %v15_v40 }
  0x2c   :  { %283 = vmatmul.msk.f32.gmra.mxu3 %vm289_vm4, %v81_v6 }
  0x31   :  { %233 = vmatmul.f32.gmra.mxu2 %v97_v8 }
  0x33   :  { %204 = vmatmul.f32.gmra.mxu1 %v16_v62 }
  0x34   :  { %178 = vmatmul.f32.gmra.mxu3 %v80_v10 }
  0x39   :  { %287 = vmatmul.msk.f32.gmra.mxu2 %vm291_vm5, %v100_v12 }
  0x3b   :  { %207 = vmatmul.f32.gmra.mxu1 %v463_v43 }
  0x9f   :  { %v170_v13 = vpop.f32.mrf.mxu0 }
  0xa0   :  { %v199_v14 = vpop.f32.mrf.mxu1 }
  0xa1   :  { %v200_v15 = vadd.f32 %v199_v14, %v170_v13 }
  0xa4   :  { %v228_v16 = vpop.f32.mrf.mxu2 }
  0xa5   :  { %v229_v17 = vadd.f32 %v228_v16, %v200_v15 }
  0xa7   :  { %240 = vst [vmem:[%s543_s2] sm:$0xff] %v229_v17  ;;  %v173_v18 = vpop.f32.mrf.mxu3  ;;  %v254_v32 = vmul.f32 %v229_v17, %v229_v17 }
  0xa8   :  { %v202_v19 = vpop.f32.mrf.mxu1 }
  0xa9   :  { %v203_v20 = vadd.f32 %v202_v19, %v173_v18 }
  0xac   :  { %v231_v21 = vpop.f32.mrf.mxu2 }
  0xad   :  { %v232_v22 = vadd.f32 %v231_v21, %v203_v20 }
  0xaf   :  { %241 = vst [vmem:[%s543_s2 + $0x8] sm:$0xff] %v232_v22  ;;  %v176_v23 = vpop.f32.mrf.mxu3  ;;  %v255_v30 = vmul.f32 %v232_v22, %v232_v22  ;;  %v244_v33 = vadd.f32 %v232_v22, %v229_v17 }
  0xb0   :  { %v205_v24 = vpop.f32.mrf.mxu1 }
  0xb1   :  { %v206_v25 = vadd.f32 %v205_v24, %v176_v23  ;;  %v258_v36 = vadd.f32 %v255_v30, %v254_v32 }
  0xb4   :  { %v234_v26 = vpop.f32.mrf.mxu2 }
  0xb5   :  { %v235_v27 = vadd.f32 %v234_v26, %v206_v25 }
  0xb7   :  { %242 = vst [vmem:[%s543_s2 + $0x10] sm:$0xff] %v235_v27  ;;  %v179_v28 = vpop.f32.mrf.mxu3  ;;  %v256_v34 = vmul.f32 %v235_v27, %v235_v27  ;;  %v245_v37 = vadd.f32 %v244_v33, %v235_v27 }
  0xb8   :  { %v208_v29 = vpop.f32.mrf.mxu1 }
  0xb9   :  { %v209_v31 = vadd.f32 %v208_v29, %v179_v28  ;;  %v259_v39 = vadd.f32 %v258_v36, %v256_v34 }
  0xbc   :  { %v237_v35 = vpop.f32.mrf.mxu2 }
  0xbd   :  { %v238_v38 = vadd.f32 %v237_v35, %v209_v31 }
  0xbf   :  { %243 = vst [vmem:[%s543_s2 + $0x18] sm:$0xff] %v238_v38  ;;  %v246_v40 = vadd.f32 %v245_v37, %v238_v38  ;;  %v257_v41 = vmul.f32 %v238_v38, %v238_v38 }
  0xc1   :  { %v247_v42 = vrot.slane %v246_v40, 4  ;;  %v260_v43 = vadd.f32 %v259_v39, %v257_v41 }
  0xc3   :  { %v248_v44 = vadd.f32 %v247_v42, %v246_v40  ;;  %v261_v45 = vrot.slane %v260_v43, 4 }
  0xc5   :  { %v249_v46 = vrot.slane %v248_v44, 2  ;;  %v262_v47 = vadd.f32 %v261_v45, %v260_v43 }
  0xc7   :  { %v250_v48 = vadd.f32 %v249_v46, %v248_v44  ;;  %v263_v49 = vrot.slane %v262_v47, 2 }
  0xc9   :  { %v251_v50 = vrot.slane %v250_v48, 1  ;;  %v264_v51 = vadd.f32 %v263_v49, %v262_v47 }
  0xcb   :  { %v252_v52 = vadd.f32 %v251_v50, %v250_v48  ;;  %v265_v53 = vrot.slane %v264_v51, 1 }
  0xcd   :  { %253 = vst [vmem:[%s544_s3] sm:$0x1] %v252_v52  ;;  %v266_v54 = vadd.f32 %v265_v53, %v264_v51 }
  0xcf   :  { %267 = vst [vmem:[%s545_s4] sm:$0x1] %v266_v54 }

// kernel: tile.23
= control target key start
LH: loop header
LB: loop body
LE: loop exit
PB: predicated region body
PF: predicated region fallthrough
CT: control target
= control target key end

     0   :  { %s28_s0 = inlined_call_operand.vmem [shape: f32[8], index: 0, kind: input, shape index: {}]   ;;  %s29_s1 = inlined_call_operand.vmem [shape: f32[16,8], index: 1, kind: output, shape index: {}]  }
   0x1   :  { %v4_v0 = vld [vmem:[%s28_s0] ss:$0 sm:$0xff] }
   0x2   :  { %5 = vst [vmem:[%s29_s1] sm:$0xff] %v4_v0 }
   0x3   :  { %8 = vst [vmem:[%s29_s1 + $0x8] sm:$0xff] %v4_v0 }

// kernel: tile.24
= control target key start
LH: loop header
LB: loop body
LE: loop exit
PB: predicated region body
PF: predicated region fallthrough
CT: control target
= control target key end

     0   :  { %s131_s10 = smov 120   ;;  %s132_s11 = smov 104   ;;  %vm3_vm0 = vcmask 64512   ;;  %vm9_vm1 = vcmask 1048512   ;;  %vm15_vm2 = vcmask 982912   ;;  %vm21_vm3 = vcmask 917312   ;;  %s207_s0 = inlined_call_operand.vmem [shape: f32[16,8], index: 0, kind: input, shape index: {}]   ;;  %s208_s1 = inlined_call_operand.vmem [shape: f32[1,128], index: 1, kind: output, shape index: {}]  }
   0x1   :  { %v101_v0 = vld [vmem:[%s207_s0 + $0xf] sm:$0x1]   ;;  %v103_v1 = vld [vmem:[%s207_s0 + $0xd] sm:$0x1]   ;;  %v105_v2 = vld [vmem:[%s207_s0 + $0xb] sm:$0x1]  }
   0x2   :  { %7 = vrot.lane.b32.xlu0 %v101_v0, %s131_s10  ;;  %19 = vrot.lane.b32.xlu1 %v103_v1, %s132_s11  ;;  %s133_s14 = smov 88   ;;  %v102_v3 = vld [vmem:[%s207_s0 + $0xe] sm:$0x1]   ;;  %v104_v4 = vld [vmem:[%s207_s0 + $0xc] sm:$0x1]   ;;  %s134_s19 = smov 112  }
   0x3   :  { %31 = vrot.lane.b32.xlu2 %v105_v2, %s133_s14  ;;  %s135_s20 = smov 96   ;;  %v106_v5 = vld [vmem:[%s207_s0 + $0xa] sm:$0x1]   ;;  %s136_s23 = smov 80   ;;  %v107_v6 = vld [vmem:[%s207_s0 + $0x9] sm:$0x1]  }
   0x4   :  { %v108_v7 = vld [vmem:[%s207_s0 + $0x8] sm:$0x1]   ;;  %s137_s28 = smov 72   ;;  %s138_s29 = smov 64   ;;  %v109_v8 = vld [vmem:[%s207_s0 + $0x7] sm:$0x1]  }
   0x5   :  { %s139_s3 = smov 56   ;;  %v110_v9 = vld [vmem:[%s207_s0 + $0x6] sm:$0x1]   ;;  %v111_v10 = vld [vmem:[%s207_s0 + $0x5] sm:$0x1]   ;;  %s140_s8 = smov 48  }
   0x6   :  { %s141_s9 = smov 40   ;;  %v112_v11 = vld [vmem:[%s207_s0 + $0x4] sm:$0x1]   ;;  %s142_s12 = smov 32   ;;  %v113_v12 = vld [vmem:[%s207_s0 + $0x3] sm:$0x1]  }
   0x7   :  { %v114_v13 = vld [vmem:[%s207_s0 + $0x2] sm:$0x1]   ;;  %s143_s17 = smov 24   ;;  %s144_s18 = smov 16   ;;  %v115_v14 = vld [vmem:[%s207_s0 + $0x1] sm:$0x1]  }
   0x8   :  { %s145_s21 = smov 8   ;;  %v2_v15 = vld [vmem:[%s207_s0] sm:$0x1]   ;;  %vm27_vm4 = vcmask 851712   ;;  %vm33_vm5 = vcmask 786112   ;;  %vm39_vm6 = vcmask 720512  }
   0x9   :  { %4 = vst.msk [vmem:[#allocation0] sm:$0x1] %vm3_vm0, %v2_v15   ;;  %vm45_vm7 = vcmask 654912   ;;  %vm51_vm8 = vcmask 589312   ;;  %vm57_vm9 = vcmask 523712   ;;  %vm63_vm10 = vcmask 458112  }
   0xa   :  { %13 = vrot.lane.b32.xlu0 %v102_v3, %s134_s19  ;;  %25 = vrot.lane.b32.xlu1 %v104_v4, %s135_s20  ;;  %vm69_vm11 = vcmask 392512   ;;  %vm75_vm12 = vcmask 326912   ;;  %vm81_vm13 = vcmask 261312   ;;  %vm87_vm14 = vcmask 195712  }
   0xb   :  { %37 = vrot.lane.b32.xlu2 %v106_v5, %s136_s23  ;;  %vm93_vm15 = vcmask 130112  }
  0x12   :  { %43 = vrot.lane.b32.xlu0 %v107_v6, %s137_s28  ;;  %49 = vrot.lane.b32.xlu1 %v108_v7, %s138_s29 }
  0x13   :  { %55 = vrot.lane.b32.xlu2 %v109_v8, %s139_s3 }
  0x1a   :  { %61 = vrot.lane.b32.xlu0 %v110_v9, %s140_s8  ;;  %67 = vrot.lane.b32.xlu1 %v111_v10, %s141_s9 }
  0x1b   :  { %73 = vrot.lane.b32.xlu2 %v112_v11, %s142_s12 }
  0x22   :  { %79 = vrot.lane.b32.xlu0 %v113_v12, %s143_s17  ;;  %85 = vrot.lane.b32.xlu1 %v114_v13, %s144_s18 }
  0x23   :  { %91 = vrot.lane.b32.xlu2 %v115_v14, %s145_s21 }
  0x5d   :  { %v32_v16 = vpop.permute.xlu2 %31  }
  0x65   :  { %v38_v17 = vpop.permute.xlu2 %37  }
  0x6d   :  { %v56_v18 = vpop.permute.xlu2 %55  }
  0x74   :  { %v8_v19 = vpop.permute.xlu0 %7   ;;  %v20_v20 = vpop.permute.xlu1 %19  }
  0x75   :  { %10 = vst.msk [vmem:[#allocation0] sm:$0x1] %vm9_vm1, %v8_v19   ;;  %v74_v21 = vpop.permute.xlu2 %73  }
  0x7c   :  { %v14_v22 = vpop.permute.xlu0 %13   ;;  %v26_v23 = vpop.permute.xlu1 %25  }
  0x7d   :  { %16 = vst.msk [vmem:[#allocation0] sm:$0x1] %vm15_vm2, %v14_v22   ;;  %v92_v24 = vpop.permute.xlu2 %91  }
  0x7e   :  { %22 = vst.msk [vmem:[#allocation0] sm:$0x1] %vm21_vm3, %v20_v20  }
  0x7f   :  { %28 = vst.msk [vmem:[#allocation0] sm:$0x1] %vm27_vm4, %v26_v23  }
  0x80   :  { %34 = vst.msk [vmem:[#allocation0] sm:$0x1] %vm33_vm5, %v32_v16  }
  0x81   :  { %40 = vst.msk [vmem:[#allocation0] sm:$0x1] %vm39_vm6, %v38_v17  }
  0x84   :  { %v44_v25 = vpop.permute.xlu0 %43   ;;  %v50_v26 = vpop.permute.xlu1 %49  }
  0x85   :  { %46 = vst.msk [vmem:[#allocation0] sm:$0x1] %vm45_vm7, %v44_v25  }
  0x86   :  { %52 = vst.msk [vmem:[#allocation0] sm:$0x1] %vm51_vm8, %v50_v26  }
  0x87   :  { %58 = vst.msk [vmem:[#allocation0] sm:$0x1] %vm57_vm9, %v56_v18  }
  0x8c   :  { %v62_v27 = vpop.permute.xlu0 %61   ;;  %v68_v28 = vpop.permute.xlu1 %67  }
  0x8d   :  { %64 = vst.msk [vmem:[#allocation0] sm:$0x1] %vm63_vm10, %v62_v27  }
  0x8e   :  { %70 = vst.msk [vmem:[#allocation0] sm:$0x1] %vm69_vm11, %v68_v28  }
  0x8f   :  { %76 = vst.msk [vmem:[#allocation0] sm:$0x1] %vm75_vm12, %v74_v21  }
  0x94   :  { %v80_v29 = vpop.permute.xlu0 %79   ;;  %v86_v30 = vpop.permute.xlu1 %85  }
  0x95   :  { %82 = vst.msk [vmem:[#allocation0] sm:$0x1] %vm81_vm13, %v80_v29  }
  0x96   :  { %88 = vst.msk [vmem:[#allocation0] sm:$0x1] %vm87_vm14, %v86_v30  }
  0x97   :  { %94 = vst.msk [vmem:[#allocation0] sm:$0x1] %vm93_vm15, %v92_v24  }
  0x9e   :  { %v97_v31 = vld [vmem:[#allocation0] sm:$0x1] }
  0x9f   :  { %100 = vst [vmem:[%s208_s1] sm:$0x1] %v97_v31 }

// kernel: resnet_basicblock_rows.5
= control target key start
LH: loop header
LB: loop body
LE: loop exit
PB: predicated region body
PF: predicated region fallthrough
CT: control target
= control target key end

     0   :  { %v28_v0 = vlaneseq  ;;  %s645_s0 = inlined_call_operand.vmem [shape: f32[32,128], index: 0, kind: input, shape index: {}]   ;;  %s646_s1 = inlined_call_operand.vmem [shape: f32[32,128], index: 1, kind: input, shape index: {}]   ;;  %s647_s2 = inlined_call_operand.vmem [shape: f32[1,1,128], index: 2, kind: input, shape index: {}]   ;;  %s648_s3 = inlined_call_operand.vmem [shape: f32[1,1,128], index: 3, kind: input, shape index: {}]   ;;  %s649_s4 = inlined_call_operand.vmem [shape: f32[1,128], index: 4, kind: input, shape index: {}]   ;;  %s650_s5 = inlined_call_operand.vmem [shape: f32[1,128], index: 5, kind: input, shape index: {}]   ;;  %s651_s6 = inlined_call_operand.hbm [shape: f32[32,128], index: 6, kind: output, shape index: {}]  }
   0x1   :  { %11 = vsyncpa [#allocation3], 0  ;;  %v499_v14 = vmov 1.0   ;;  %v469_v36 = vld [vmem:[%s647_s2] ss:$0 sm:$0xff]  ;;  %v370_v56 = vld [vmem:[%s646_s1 + $0x8] sm:$0xff] }
   0x2   :  { %v538_v1 = vshrl.u32 %v28_v0, 7  ;;  %v238_v2 = vand.u32 127, %v28_v0  ;;  %v470_v37 = vld [vmem:[%s648_s3] ss:$0 sm:$0xff]  ;;  %v371_v57 = vld [vmem:[%s646_s1 + $0x10] sm:$0xff]  ;;  %v372_v59 = vld [vmem:[%s646_s1 + $0x18] sm:$0xff] }
   0x3   :  { %v360_v51 = vld [vmem:[%s649_s4] sm:$0x1]  ;;  %v366_v62 = vld [vmem:[%s645_s0 + $0x8] sm:$0xff]  ;;  %v367_v63 = vld [vmem:[%s645_s0 + $0x10] sm:$0xff]  ;;  %s405_s20 = sshll.u32 %s651_s6, 4  ;;  %s502_s21 = smov 8   ;;  %s406_s20 = int_to_ptr.hbm [resolvable:$true] %s405_s20 }
   0x4   :  { %v44_v3 = vadd.s32 120, %v538_v1  ;;  %v541_v4 = vand.u32 7, %v238_v2  ;;  %v43_v5 = vadd.s32 112, %v538_v1  ;;  %v42_v6 = vadd.s32 104, %v538_v1  ;;  %v362_v54 = vld [vmem:[%s650_s5] sm:$0x1] }
   0x5   :  { %v41_v7 = vadd.s32 96, %v538_v1  ;;  %v40_v11 = vadd.s32 88, %v538_v1  ;;  %v39_v13 = vadd.s32 80, %v538_v1  ;;  %v38_v16 = vadd.s32 72, %v538_v1  ;;  %v369_v55 = vld [vmem:[%s646_s1] sm:$0xff]  ;;  %s500_s1 = smov [#allocation2]  }
   0x6   :  { %v154_v8 = vand.u32 7, %v44_v3  ;;  %v147_v9 = vand.u32 7, %v43_v5  ;;  %v140_v10 = vand.u32 7, %v42_v6  ;;  %v37_v18 = vadd.s32 64, %v538_v1  ;;  %v365_v61 = vld [vmem:[%s645_s0] sm:$0xff]  ;;  %s403_s17 = sshll.u32 %s500_s1, 4  ;;  %s404_s17 = int_to_ptr.vmem [resolvable:$true] %s403_s17 }
   0x7   :  { %v133_v12 = vand.u32 7, %v41_v7  ;;  %v126_v15 = vand.u32 7, %v40_v11  ;;  %v119_v17 = vand.u32 7, %v39_v13  ;;  %v112_v19 = vand.u32 7, %v38_v16 }
   0x8   :  { %vm266_vm0 = vcmp.eq.s32.totalorder %v154_v8, %v541_v4  ;;  %vm265_vm1 = vcmp.eq.s32.totalorder %v147_v9, %v541_v4  ;;  %vm264_vm2 = vcmp.eq.s32.totalorder %v140_v10, %v541_v4  ;;  %v36_v20 = vadd.s32 56, %v538_v1 }
   0x9   :  { %433 = vmatpush.msk.msra.mxu0 %vm266_vm0, %v499_v14  ;;  %449 = vmatpush.msk.msra.mxu1 %vm266_vm0, %v499_v14  ;;  %vm263_vm3 = vcmp.eq.s32.totalorder %v133_v12, %v541_v4  ;;  %vm262_vm4 = vcmp.eq.s32.totalorder %v126_v15, %v541_v4  ;;  %vm261_vm5 = vcmp.eq.s32.totalorder %v119_v17, %v541_v4  ;;  %v105_v21 = vand.u32 7, %v37_v18 }
   0xa   :  { %v35_v22 = vadd.s32 48, %v538_v1  ;;  %vm260_vm6 = vcmp.eq.s32.totalorder %v112_v19, %v541_v4  ;;  %v98_v23 = vand.u32 7, %v36_v20  ;;  %v34_v24 = vadd.s32 40, %v538_v1 }
   0xb   :  { %434 = vmatpush.msk.msra.mxu0 %vm265_vm1, %v499_v14  ;;  %450 = vmatpush.msk.msra.mxu1 %vm265_vm1, %v499_v14  ;;  %vm259_vm7 = vcmp.eq.s32.totalorder %v105_v21, %v541_v4  ;;  %v33_v26 = vadd.s32 32, %v538_v1  ;;  %v32_v28 = vadd.s32 24, %v538_v1  ;;  %v31_v30 = vadd.s32 16, %v538_v1 }
   0xc   :  { %v91_v25 = vand.u32 7, %v35_v22  ;;  %vm258_vm8 = vcmp.eq.s32.totalorder %v98_v23, %v541_v4  ;;  %v84_v27 = vand.u32 7, %v34_v24  ;;  %v30_v32 = vadd.s32 8, %v538_v1 }
   0xd   :  { %435 = vmatpush.msk.msra.mxu0 %vm264_vm2, %v499_v14  ;;  %451 = vmatpush.msk.msra.mxu1 %vm264_vm2, %v499_v14  ;;  %v77_v29 = vand.u32 7, %v33_v26  ;;  %v70_v31 = vand.u32 7, %v32_v28  ;;  %v63_v33 = vand.u32 7, %v31_v30  ;;  %v49_v35 = vand.u32 7, %v538_v1 }
   0xe   :  { %vm257_vm9 = vcmp.eq.s32.totalorder %v91_v25, %v541_v4  ;;  %vm256_vm10 = vcmp.eq.s32.totalorder %v84_v27, %v541_v4  ;;  %v56_v34 = vand.u32 7, %v30_v32 }
   0xf   :  { %436 = vmatpush.msk.msra.mxu0 %vm263_vm3, %v499_v14  ;;  %452 = vmatpush.msk.msra.mxu1 %vm263_vm3, %v499_v14  ;;  %vm255_vm11 = vcmp.eq.s32.totalorder %v77_v29, %v541_v4  ;;  %vm254_vm12 = vcmp.eq.s32.totalorder %v70_v31, %v541_v4  ;;  %vm253_vm13 = vcmp.eq.s32.totalorder %v63_v33, %v541_v4 }
  0x10   :  { %vm252_vm14 = vcmp.eq.s32.totalorder %v56_v34, %v541_v4  ;;  %vm251_vm15 = vcmp.eq.s32.totalorder %v49_v35, %v541_v4  ;;  %v368_v4 = vld [vmem:[%s645_s0 + $0x18] sm:$0xff]  ;;  %s501_s0 = smov 128  }
  0x11   :  { %437 = vmatpush.msk.msra.mxu0 %vm262_vm4, %v499_v14  ;;  %453 = vmatpush.msk.msra.mxu1 %vm262_vm4, %v499_v14 }
  0x13   :  { %438 = vmatpush.msk.msra.mxu0 %vm261_vm5, %v499_v14  ;;  %454 = vmatpush.msk.msra.mxu1 %vm261_vm5, %v499_v14 }
  0x15   :  { %439 = vmatpush.msk.msra.mxu0 %vm260_vm6, %v499_v14  ;;  %455 = vmatpush.msk.msra.mxu1 %vm260_vm6, %v499_v14 }
  0x17   :  { %440 = vmatpush.msk.msra.mxu0 %vm259_vm7, %v499_v14  ;;  %456 = vmatpush.msk.msra.mxu1 %vm259_vm7, %v499_v14 }
  0x19   :  { %441 = vmatpush.msk.msra.mxu0 %vm258_vm8, %v499_v14  ;;  %457 = vmatpush.msk.msra.mxu1 %vm258_vm8, %v499_v14 }
  0x1b   :  { %442 = vmatpush.msk.msra.mxu0 %vm257_vm9, %v499_v14  ;;  %458 = vmatpush.msk.msra.mxu1 %vm257_vm9, %v499_v14 }
  0x1d   :  { %443 = vmatpush.msk.msra.mxu0 %vm256_vm10, %v499_v14  ;;  %459 = vmatpush.msk.msra.mxu1 %vm256_vm10, %v499_v14 }
  0x1f   :  { %444 = vmatpush.msk.msra.mxu0 %vm255_vm11, %v499_v14  ;;  %460 = vmatpush.msk.msra.mxu1 %vm255_vm11, %v499_v14 }
  0x21   :  { %445 = vmatpush.msk.msra.mxu0 %vm254_vm12, %v499_v14  ;;  %461 = vmatpush.msk.msra.mxu1 %vm254_vm12, %v499_v14 }
  0x23   :  { %446 = vmatpush.msk.msra.mxu0 %vm253_vm13, %v499_v14  ;;  %462 = vmatpush.msk.msra.mxu1 %vm253_vm13, %v499_v14 }
  0x25   :  { %447 = vmatpush.msk.msra.mxu0 %vm252_vm14, %v499_v14  ;;  %463 = vmatpush.msk.msra.mxu1 %vm252_vm14, %v499_v14 }
  0x27   :  { %448 = vmatpush.msk.msra.mxu0 %vm251_vm15, %v499_v14  ;;  %464 = vmatpush.msk.msra.mxu1 %vm251_vm15, %v499_v14 }
  0x28   :  { %321 = vmatmul.f32.vlgmr.msra.gmra.mxu0 %v469_v36  ;;  %341 = vmatmul.f32.vlgmr.msra.gmra.mxu1 %v470_v37 }
  0xa5   :  { %v322_v38 = vpop.f32.mrf.mxu0  ;;  %v342_v39 = vpop.f32.mrf.mxu1 }
  0xa6   :  { %v345_v40 = vmul.f32 0.001953125, %v322_v38  ;;  %v346_v41 = vmul.f32 0.001953125, %v342_v39 }
  0xa8   :  { %v347_v42 = vmul.f32 %v345_v40, %v345_v40 }
  0xaa   :  { %v348_v43 = vsub.f32 %v346_v41, %v347_v42 }
  0xac   :  { %v349_v44 = vadd.f32 1e-05, %v348_v43 }
  0xae   :  { %471 = vrsqrt.f32 %v349_v44  ;;  %vm356_vm1 = vweird.f32 %v349_v44 }
  0xb4   :  { %v472_v45 = vpop.eup %471 }
  0xb5   :  { %v351_v46 = vmul.f32 %v472_v45, %v349_v44  ;;  %vm357_vm0 = vweird.f32 %v472_v45 }
  0xb6   :  { %vm358_vm2 = vmor %vm356_vm1, %vm357_vm0 }
  0xb7   :  { %v352_v47 = vmul.f32 %v472_v45, %v351_v46 }
  0xb9   :  { %v353_v48 = vmul.f32 0.5, %v352_v47 }
  0xbb   :  { %v354_v49 = vsub.f32 1.5, %v353_v48 }
  0xbd   :  { %v355_v50 = vmul.f32 %v472_v45, %v354_v49 }
  0xbf   :  { %v359_v52 = vsel %vm358_vm2, %v472_v45, %v355_v50 }
  0xc0   :  { %v361_v53 = vmul.f32 %v360_v51, %v359_v52 }
  0xc2   :  { %v363_v58 = vmul.f32 %v361_v53, %v345_v40  ;;  %v374_v60 = vperm.slane %v361_v53, 0 }
  0xc4   :  { %v364_v0 = vsub.f32 %v362_v54, %v363_v58  ;;  %v376_v1 = vmul.f32 %v374_v60, %v369_v55  ;;  %v377_v2 = vmul.f32 %v374_v60, %v370_v56  ;;  %v378_v3 = vmul.f32 %v374_v60, %v371_v57 }
  0xc5   :  { %v379_v5 = vmul.f32 %v374_v60, %v372_v59 }
  0xc6   :  { %v385_v6 = vperm.slane %v364_v0, 0  ;;  %v380_v7 = vadd.f32 %v376_v1, %v365_v61  ;;  %v381_v8 = vadd.f32 %v377_v2, %v366_v62  ;;  %v382_v9 = vadd.f32 %v378_v3, %v367_v63 }
  0xc7   :  { %v383_v10 = vadd.f32 %v379_v5, %v368_v4 }
  0xc8   :  { %v387_v11 = vadd.f32 %v385_v6, %v380_v7  ;;  %v388_v12 = vadd.f32 %v385_v6, %v381_v8  ;;  %v389_v13 = vadd.f32 %v385_v6, %v382_v9 }
  0xc9   :  { %v390_v14 = vadd.f32 %v385_v6, %v383_v10 }
  0xca   :  { %v391_v15 = vmax.f32 %v387_v11, 0.0  ;;  %v392_v16 = vmax.f32 %v388_v12, 0.0  ;;  %v393_v17 = vmax.f32 %v389_v13, 0.0 }
  0xcb   :  { %v394_v18 = vmax.f32 %v390_v14, 0.0 }
  0xcc   :  { %395 = vst [vmem:[#allocation2] sm:$0xff] %v391_v15 }
  0xcd   :  { %396 = vst [vmem:[#allocation2 + $0x8] sm:$0xff] %v392_v16 }
  0xce   :  { %397 = vst [vmem:[#allocation2 + $0x10] sm:$0xff] %v393_v17 }
  0xcf   :  { %398 = vst [vmem:[#allocation2 + $0x18] sm:$0xff] %v394_v18 }
  0xd0   :  { %411 = dma.vmem_to_hbm [thread:$0]  %s404_s17, 512, %s406_s20, [#allocation3], %s501_s0, %s501_s0, %s502_s21  }
  0xd1   :  { %497 = dma.done.wait [#allocation3], 512  }
  0xd2   :  { %498 = vsyncadd [#allocation3], 4294966784 }
  0xd3   :  { %416 = vsyncpa [#allocation3], 1 }

// kernel: resnet_basicblock_rows.4
= control target key start
LH: loop header
LB: loop body
LE: loop exit
PB: predicated region body
PF: predicated region fallthrough
CT: control target
= control target key end

     0   :  { %v30_v0 = vlaneseq  ;;  %v711_v16 = vmov 1.0   ;;  %s1152_s1 = inlined_call_operand.vmem [shape: f32[1,1,128], index: 1, kind: input, shape index: {}]   ;;  %s1153_s2 = inlined_call_operand.vmem [shape: f32[1,1,128], index: 2, kind: input, shape index: {}]   ;;  %s1154_s5 = inlined_call_operand.vmem [shape: f32[384,128], index: 5, kind: input, shape index: {}]   ;;  %s1155_s3 = inlined_call_operand.vmem [shape: f32[1,128], index: 3, kind: input, shape index: {}]   ;;  %s1156_s4 = inlined_call_operand.vmem [shape: f32[1,128], index: 4, kind: input, shape index: {}]   ;;  %s1157_s0 = inlined_call_operand.vmem [shape: f32[32,128], index: 0, kind: input, shape index: {}]   ;;  %s1158_s6 = inlined_call_operand.vmem [shape: f32[32,128], index: 6, kind: output, shape index: {0}]   ;;  %s1159_s7 = inlined_call_operand.vmem [shape: f32[1,1,128], index: 7, kind: output, shape index: {1}]   ;;  %s1160_s8 = inlined_call_operand.vmem [shape: f32[1,1,128], index: 8, kind: output, shape index: {2}]  }
   0x1   :  { %v707_v52 = vld [vmem:[%s1152_s1] ss:$0 sm:$0xff]  ;;  %v502_v54 = vld [vmem:[%s1154_s5 + $0xf8] sm:$0xff]  ;;  %v501_v55 = vld [vmem:[%s1154_s5 + $0xf0] sm:$0xff] }
   0x2   :  { %v757_v1 = vshrl.u32 %v30_v0, 7  ;;  %v240_v2 = vand.u32 127, %v30_v0  ;;  %v708_v53 = vld [vmem:[%s1153_s2] ss:$0 sm:$0xff]  ;;  %548 = vmatpush.msra.mxu3 %v502_v54  ;;  %v486_v56 = vld [vmem:[%s1154_s5 + $0x78] sm:$0xff]  ;;  %v500_v58 = vld [vmem:[%s1154_s5 + $0xe8] sm:$0xff] }
   0x3   :  { %v518_v57 = vld [vmem:[%s1154_s5 + $0x178] sm:$0xff]  ;;  %519 = vmatpush.msra.mxu2 %v486_v56  ;;  %v485_v59 = vld [vmem:[%s1154_s5 + $0x70] sm:$0xff]  ;;  %v499_v61 = vld [vmem:[%s1154_s5 + $0xe0] sm:$0xff] }
   0x4   :  { %v46_v3 = vadd.s32 120, %v757_v1  ;;  %v245_v4 = vand.u32 7, %v240_v2  ;;  %v45_v5 = vadd.s32 112, %v757_v1  ;;  %v44_v6 = vadd.s32 104, %v757_v1  ;;  %549 = vmatpush.msra.mxu3 %v501_v55  ;;  %577 = vmatpush.msra.mxu0 %v518_v57  ;;  %v517_v60 = vld [vmem:[%s1154_s5 + $0x170] sm:$0xff]  ;;  %v484_v62 = vld [vmem:[%s1154_s5 + $0x68] sm:$0xff] }
   0x5   :  { %v43_v7 = vadd.s32 96, %v757_v1  ;;  %v42_v11 = vadd.s32 88, %v757_v1  ;;  %v41_v15 = vadd.s32 80, %v757_v1  ;;  %v40_v19 = vadd.s32 72, %v757_v1  ;;  %520 = vmatpush.msra.mxu2 %v485_v59  ;;  %v516_v63 = vld [vmem:[%s1154_s5 + $0x168] sm:$0xff]  ;;  %v498_v0 = vld [vmem:[%s1154_s5 + $0xd8] sm:$0xff] }
   0x6   :  { %v156_v8 = vand.u32 7, %v46_v3  ;;  %v149_v9 = vand.u32 7, %v45_v5  ;;  %v142_v10 = vand.u32 7, %v44_v6  ;;  %v39_v22 = vadd.s32 64, %v757_v1  ;;  %550 = vmatpush.msra.mxu3 %v500_v58  ;;  %578 = vmatpush.msra.mxu0 %v517_v60  ;;  %v483_v2 = vld [vmem:[%s1154_s5 + $0x60] sm:$0xff]  ;;  %v482_v5 = vld [vmem:[%s1154_s5 + $0x58] sm:$0xff] }
   0x7   :  { %v135_v14 = vand.u32 7, %v43_v7  ;;  %v128_v18 = vand.u32 7, %v42_v11  ;;  %v121_v21 = vand.u32 7, %v41_v15  ;;  %v114_v24 = vand.u32 7, %v40_v19  ;;  %521 = vmatpush.msra.mxu2 %v484_v62  ;;  %v515_v3 = vld [vmem:[%s1154_s5 + $0x160] sm:$0xff]  ;;  %v514_v6 = vld [vmem:[%s1154_s5 + $0x158] sm:$0xff] }
   0x8   :  { %vm764_vm0 = vcmp.eq.s32.totalorder %v156_v8, %v245_v4  ;;  %vm768_vm1 = vcmp.eq.s32.totalorder %v149_v9, %v245_v4  ;;  %vm776_vm2 = vcmp.eq.s32.totalorder %v142_v10, %v245_v4  ;;  %v38_v25 = vadd.s32 56, %v757_v1  ;;  %551 = vmatpush.msra.mxu3 %v499_v61  ;;  %579 = vmatpush.msra.mxu0 %v516_v63  ;;  %v496_v7 = vld [vmem:[%s1154_s5 + $0xc8] sm:$0xff]  ;;  %v481_v8 = vld [vmem:[%s1154_s5 + $0x50] sm:$0xff]  ;;  %v495_v10 = vld [vmem:[%s1154_s5 + $0xc0] sm:$0xff] }
   0x9   :  { %662 = vmatpush.msk.msra.mxu1 %vm764_vm0, %v711_v16  ;;  %vm784_vm3 = vcmp.eq.s32.totalorder %v135_v14, %v245_v4  ;;  %vm792_vm4 = vcmp.eq.s32.totalorder %v128_v18, %v245_v4  ;;  %vm800_vm5 = vcmp.eq.s32.totalorder %v121_v21, %v245_v4  ;;  %v107_v27 = vand.u32 7, %v39_v22  ;;  %522 = vmatpush.msra.mxu2 %v483_v2  ;;  %v513_v9 = vld [vmem:[%s1154_s5 + $0x150] sm:$0xff]  ;;  %v480_v11 = vld [vmem:[%s1154_s5 + $0x48] sm:$0xff]  ;;  %v494_v13 = vld [vmem:[%s1154_s5 + $0xb8] sm:$0xff] }
   0xa   :  { %v37_v28 = vadd.s32 48, %v757_v1  ;;  %vm808_vm6 = vcmp.eq.s32.totalorder %v114_v24, %v245_v4  ;;  %v100_v30 = vand.u32 7, %v38_v25  ;;  %v36_v31 = vadd.s32 40, %v757_v1  ;;  %552 = vmatpush.msra.mxu3 %v498_v0  ;;  %580 = vmatpush.msra.mxu0 %v515_v3  ;;  %v512_v12 = vld [vmem:[%s1154_s5 + $0x148] sm:$0xff]  ;;  %v479_v15 = vld [vmem:[%s1154_s5 + $0x40] sm:$0xff]  ;;  %v493_v17 = vld [vmem:[%s1154_s5 + $0xb0] sm:$0xff] }
   0xb   :  { %663 = vmatpush.msk.msra.mxu1 %vm768_vm1, %v711_v16  ;;  %vm816_vm7 = vcmp.eq.s32.totalorder %v107_v27, %v245_v4  ;;  %v35_v34 = vadd.s32 32, %v757_v1  ;;  %v829_v37 = vadd.s32 24, %v757_v1  ;;  %v839_v40 = vadd.s32 16, %v757_v1  ;;  %523 = vmatpush.msra.mxu2 %v482_v5  ;;  %v478_v18 = vld [vmem:[%s1154_s5 + $0x38] sm:$0xff]  ;;  %v492_v20 = vld [vmem:[%s1154_s5 + $0xa8] sm:$0xff]  ;;  %v477_v21 = vld [vmem:[%s1154_s5 + $0x30] sm:$0xff] }
   0xc   :  { %v93_v33 = vand.u32 7, %v37_v28  ;;  %vm824_vm8 = vcmp.eq.s32.totalorder %v100_v30, %v245_v4  ;;  %v86_v36 = vand.u32 7, %v36_v31  ;;  %v850_v43 = vadd.s32 8, %v757_v1  ;;  %581 = vmatpush.msra.mxu0 %v514_v6  ;;  %v510_v19 = vld [vmem:[%s1154_s5 + $0x138] sm:$0xff]  ;;  %v509_v22 = vld [vmem:[%s1154_s5 + $0x130] sm:$0xff]  ;;  %v491_v23 = vld [vmem:[%s1154_s5 + $0xa0] sm:$0xff] }
   0xd   :  { %664 = vmatpush.msk.msra.mxu1 %vm776_vm2, %v711_v16  ;;  %v79_v39 = vand.u32 7, %v35_v34  ;;  %v72_v42 = vand.u32 7, %v829_v37  ;;  %v65_v45 = vand.u32 7, %v839_v40  ;;  %v51_v49 = vand.u32 7, %v757_v1  ;;  %524 = vmatpush.msra.mxu2 %v481_v8  ;;  %v476_v24 = vld [vmem:[%s1154_s5 + $0x28] sm:$0xff]  ;;  %v490_v26 = vld [vmem:[%s1154_s5 + $0x98] sm:$0xff] }
   0xe   :  { %vm834_vm9 = vcmp.eq.s32.totalorder %v93_v33, %v245_v4  ;;  %vm844_vm10 = vcmp.eq.s32.totalorder %v86_v36, %v245_v4  ;;  %v58_v47 = vand.u32 7, %v850_v43  ;;  %582 = vmatpush.msra.mxu0 %v513_v9  ;;  %v508_v25 = vld [vmem:[%s1154_s5 + $0x128] sm:$0xff]  ;;  %v475_v27 = vld [vmem:[%s1154_s5 + $0x20] sm:$0xff]  ;;  %v489_v30 = vld [vmem:[%s1154_s5 + $0x90] sm:$0xff] }
   0xf   :  { %665 = vmatpush.msk.msra.mxu1 %vm784_vm3, %v711_v16  ;;  %vm855_vm11 = vcmp.eq.s32.totalorder %v79_v39, %v245_v4  ;;  %vm863_vm12 = vcmp.eq.s32.totalorder %v72_v42, %v245_v4  ;;  %vm871_vm13 = vcmp.eq.s32.totalorder %v65_v45, %v245_v4  ;;  %vm886_vm15 = vcmp.eq.s32.totalorder %v51_v49, %v245_v4  ;;  %v507_v28 = vld [vmem:[%s1154_s5 + $0x120] sm:$0xff]  ;;  %v474_v31 = vld [vmem:[%s1154_s5 + $0x18] sm:$0xff]  ;;  %v488_v33 = vld [vmem:[%s1154_s5 + $0x88] sm:$0xff] }
  0x10   :  { %vm879_vm14 = vcmp.eq.s32.totalorder %v58_v47, %v245_v4  ;;  %v497_v4 = vld [vmem:[%s1154_s5 + $0xd0] sm:$0xff]  ;;  %525 = vmatpush.msra.mxu2 %v480_v11  ;;  %583 = vmatpush.msra.mxu0 %v512_v12  ;;  %v506_v32 = vld [vmem:[%s1154_s5 + $0x118] sm:$0xff]  ;;  %v487_v41 = vld [vmem:[%s1154_s5 + $0x80] sm:$0xff] }
  0x11   :  { %666 = vmatpush.msk.msra.mxu1 %vm792_vm4, %v711_v16  ;;  %553 = vmatpush.msra.mxu3 %v497_v4  ;;  %v473_v35 = vld [vmem:[%s1154_s5 + $0x10] sm:$0xff]  ;;  %v472_v42 = vld [vmem:[%s1154_s5 + $0x8] sm:$0xff]  ;;  %v471_v47 = vld [vmem:[%s1154_s5] sm:$0xff] }
  0x12   :  { %526 = vmatpush.msra.mxu2 %v479_v15  ;;  %v505_v36 = vld [vmem:[%s1154_s5 + $0x110] sm:$0xff]  ;;  %v504_v45 = vld [vmem:[%s1154_s5 + $0x108] sm:$0xff]  ;;  %v503_v48 = vld [vmem:[%s1154_s5 + $0x100] sm:$0xff] }
  0x13   :  { %667 = vmatpush.msk.msra.mxu1 %vm800_vm5, %v711_v16  ;;  %554 = vmatpush.msra.mxu3 %v496_v7  ;;  %v362_v55 = vld [vmem:[%s1155_s3] sm:$0x1]  ;;  %v370_v62 = vld [vmem:[%s1157_s0 + $0x18] sm:$0xff]  ;;  %v368_v63 = vld [vmem:[%s1157_s0 + $0x8] sm:$0xff]  ;;  %v393_v7 = vand.u32 15, %v757_v1 }
  0x14   :  { %527 = vmatpush.msra.mxu2 %v478_v18  ;;  %v364_v58 = vld [vmem:[%s1156_s4] sm:$0x1]  ;;  %v369_v2 = vld [vmem:[%s1157_s0 + $0x10] sm:$0xff] }
  0x15   :  { %668 = vmatpush.msk.msra.mxu1 %vm808_vm6, %v711_v16  ;;  %555 = vmatpush.msra.mxu3 %v495_v10  ;;  %v367_v61 = vld [vmem:[%s1157_s0] sm:$0xff] }
  0x16   :  { %528 = vmatpush.msra.mxu2 %v477_v21 }
  0x17   :  { %669 = vmatpush.msk.msra.mxu1 %vm816_vm7, %v711_v16  ;;  %556 = vmatpush.msra.mxu3 %v494_v13 }
  0x18   :  { %529 = vmatpush.msra.mxu2 %v476_v24 }
  0x19   :  { %670 = vmatpush.msk.msra.mxu1 %vm824_vm8, %v711_v16  ;;  %557 = vmatpush.msra.mxu3 %v493_v17 }
  0x1a   :  { %530 = vmatpush.msra.mxu2 %v475_v27 }
  0x1b   :  { %671 = vmatpush.msk.msra.mxu1 %vm834_vm9, %v711_v16  ;;  %558 = vmatpush.msra.mxu3 %v492_v20 }
  0x1c   :  { %531 = vmatpush.msra.mxu2 %v474_v31 }
  0x1d   :  { %672 = vmatpush.msk.msra.mxu1 %vm844_vm10, %v711_v16  ;;  %559 = vmatpush.msra.mxu3 %v491_v23  ;;  %v400_v23 = vand.u32 15, %v850_v43 }
  0x1e   :  { %532 = vmatpush.msra.mxu2 %v473_v35 }
  0x1f   :  { %673 = vmatpush.msk.msra.mxu1 %vm855_vm11, %v711_v16  ;;  %560 = vmatpush.msra.mxu3 %v490_v26 }
  0x20   :  { %533 = vmatpush.msra.mxu2 %v472_v42 }
  0x21   :  { %674 = vmatpush.msk.msra.mxu1 %vm863_vm12, %v711_v16  ;;  %561 = vmatpush.msra.mxu3 %v489_v30 }
  0x22   :  { %534 = vmatpush.msra.mxu2 %v471_v47 }
  0x23   :  { %675 = vmatpush.msk.msra.mxu1 %vm871_vm13, %v711_v16  ;;  %562 = vmatpush.msra.mxu3 %v488_v33 }
  0x25   :  { %676 = vmatpush.msk.msra.mxu1 %vm879_vm14, %v711_v16  ;;  %563 = vmatpush.msra.mxu3 %v487_v41 }
  0x27   :  { %677 = vmatpush.msk.msra.mxu1 %vm886_vm15, %v711_v16 }
  0x28   :  { %323 = vmatmul.f32.vlgmr.msra.gmra.mxu1 %v707_v52 }
  0x29   :  { %678 = vmatpush.msk.msrb.mxu1 %vm764_vm0, %v711_v16 }
  0x2b   :  { %679 = vmatpush.msk.msrb.mxu1 %vm768_vm1, %v711_v16 }
  0x2d   :  { %680 = vmatpush.msk.msrb.mxu1 %vm776_vm2, %v711_v16 }
  0x2f   :  { %681 = vmatpush.msk.msrb.mxu1 %vm784_vm3, %v711_v16  ;;  %vm445_vm3 = vcmp.lt.s32.totalorder %v757_v1, 1 }
  0x31   :  { %682 = vmatpush.msk.msrb.mxu1 %vm792_vm4, %v711_v16  ;;  %vm702_vm4 = vcmp.ne.s32.totalorder %v393_v7, 0 }
  0x33   :  { %683 = vmatpush.msk.msrb.mxu1 %vm800_vm5, %v711_v16  ;;  %vm462_vm5 = vcmp.lt.s32.totalorder %v757_v1, 7 }
  0x35   :  { %684 = vmatpush.msk.msrb.mxu1 %vm808_vm6, %v711_v16  ;;  %vm704_vm6 = vcmp.ne.s32.totalorder %v400_v23, 15 }
  0x37   :  { %685 = vmatpush.msk.msrb.mxu1 %vm816_vm7, %v711_v16 }
  0x39   :  { %686 = vmatpush.msk.msrb.mxu1 %vm824_vm8, %v711_v16 }
  0x3b   :  { %687 = vmatpush.msk.msrb.mxu1 %vm834_vm9, %v711_v16 }
  0x3d   :  { %688 = vmatpush.msk.msrb.mxu1 %vm844_vm10, %v711_v16 }
  0x3f   :  { %689 = vmatpush.msk.msrb.mxu1 %vm855_vm11, %v711_v16 }
  0x41   :  { %690 = vmatpush.msk.msrb.mxu1 %vm863_vm12, %v711_v16 }
  0x43   :  { %691 = vmatpush.msk.msrb.mxu1 %vm871_vm13, %v711_v16 }
  0x45   :  { %692 = vmatpush.msk.msrb.mxu1 %vm879_vm14, %v711_v16 }
  0x47   :  { %693 = vmatpush.msk.msrb.mxu1 %vm886_vm15, %v711_v16  ;;  %v511_v16 = vld [vmem:[%s1154_s5 + $0x140] sm:$0xff] }
  0x48   :  { %343 = vmatmul.f32.vlgmr.msrb.gmra.mxu1 %v708_v53  ;;  %584 = vmatpush.msra.mxu0 %v511_v16 }
  0x4a   :  { %585 = vmatpush.msra.mxu0 %v510_v19 }
  0x4c   :  { %586 = vmatpush.msra.mxu0 %v509_v22 }
  0x4e   :  { %587 = vmatpush.msra.mxu0 %v508_v25 }
  0x50   :  { %588 = vmatpush.msra.mxu0 %v507_v28  ;;  %v407_v28 = vand.u32 15, %v839_v40 }
  0x52   :  { %589 = vmatpush.msra.mxu0 %v506_v32  ;;  %vm703_vm7 = vcmp.ne.s32.totalorder %v407_v28, 0  ;;  %v414_v32 = vand.u32 15, %v829_v37 }
  0x54   :  { %590 = vmatpush.msra.mxu0 %v505_v36  ;;  %vm705_vm8 = vcmp.ne.s32.totalorder %v414_v32, 15 }
  0x56   :  { %591 = vmatpush.msra.mxu0 %v504_v45 }
  0x58   :  { %592 = vmatpush.msra.mxu0 %v503_v48 }
  0xa5   :  { %v324_v14 = vpop.f32.mrf.mxu1 }
  0xa6   :  { %v347_v29 = vmul.f32 0.001953125, %v324_v14 }
  0xa8   :  { %v349_v38 = vmul.f32 %v347_v29, %v347_v29 }
  0xc5   :  { %v344_v34 = vpop.f32.mrf.mxu1 }
  0xc6   :  { %v348_v39 = vmul.f32 0.001953125, %v344_v34 }
  0xc8   :  { %v350_v44 = vsub.f32 %v348_v39, %v349_v38 }
  0xca   :  { %v351_v46 = vadd.f32 1e-05, %v350_v44 }
  0xcc   :  { %709 = vrsqrt.f32 %v351_v46  ;;  %vm358_vm1 = vweird.f32 %v351_v46 }
  0xd2   :  { %v710_v49 = vpop.eup %709 }
  0xd3   :  { %v353_v50 = vmul.f32 %v710_v49, %v351_v46  ;;  %vm359_vm0 = vweird.f32 %v710_v49 }
  0xd4   :  { %vm360_vm2 = vmor %vm358_vm1, %vm359_vm0 }
  0xd5   :  { %v354_v51 = vmul.f32 %v710_v49, %v353_v50 }
  0xd7   :  { %v355_v52 = vmul.f32 0.5, %v354_v51 }
  0xd9   :  { %v356_v53 = vsub.f32 1.5, %v355_v52 }
  0xdb   :  { %v357_v54 = vmul.f32 %v710_v49, %v356_v53 }
  0xdd   :  { %v361_v56 = vsel %vm360_vm2, %v710_v49, %v357_v54 }
  0xde   :  { %v363_v57 = vmul.f32 %v362_v55, %v361_v56 }
  0xe0   :  { %v365_v59 = vmul.f32 %v363_v57, %v347_v29  ;;  %v372_v60 = vperm.slane %v363_v57, 0 }
  0xe2   :  { %v366_v0 = vsub.f32 %v364_v58, %v365_v59  ;;  %v374_v3 = vmul.f32 %v372_v60, %v367_v61  ;;  %v377_v5 = vmul.f32 %v372_v60, %v370_v62  ;;  %v375_v6 = vmul.f32 %v372_v60, %v368_v63 }
  0xe3   :  { %v376_v11 = vmul.f32 %v372_v60, %v369_v2 }
  0xe4   :  { %v379_v4 = vperm.slane %v366_v0, 0 }
  0xe6   :  { %v381_v8 = vadd.f32 %v379_v4, %v374_v3  ;;  %v384_v9 = vadd.f32 %v379_v4, %v377_v5  ;;  %v382_v10 = vadd.f32 %v379_v4, %v375_v6  ;;  %v383_v15 = vadd.f32 %v379_v4, %v376_v11 }
  0xe8   :  { %v385_v12 = vmax.f32 %v381_v8, 0.0  ;;  %v388_v13 = vmax.f32 %v384_v9, 0.0  ;;  %v386_v14 = vmax.f32 %v382_v10, 0.0  ;;  %v387_v22 = vmax.f32 %v383_v15, 0.0 }
  0xea   :  { %564 = vmatmul.f32.vlgmr.msra.gmra.mxu3 %v385_v12  ;;  %v441_v16 = vrot.slane %v385_v12, 7  ;;  %v444_v17 = vrot.slane %v388_v13, 7  ;;  %v458_v18 = vrot.slane %v385_v12, 1  ;;  %v459_v19 = vrot.slane %v386_v14, 1 }
  0xeb   :  { %v442_v24 = vrot.slane %v386_v14, 7  ;;  %v460_v25 = vrot.slane %v387_v22, 1  ;;  %v443_v29 = vrot.slane %v387_v22, 7  ;;  %v461_v30 = vrot.slane %v388_v13, 1 }
  0xec   :  { %v449_v20 = vsel %vm445_vm3, %v444_v17, %v441_v16  ;;  %v465_v21 = vsel %vm462_vm5, %v458_v18, %v459_v19 }
  0xed   :  { %695 = vmatmul.msk.f32.vlgmr.msra.gmra.mxu2 %vm702_vm4, %v449_v20  ;;  %593 = vmatmul.f32.vlgmr.msra.gmra.mxu0 %v465_v21  ;;  %v448_v26 = vsel %vm445_vm3, %v441_v16, %v442_v24  ;;  %v464_v27 = vsel %vm462_vm5, %v459_v19, %v460_v25  ;;  %v447_v43 = vsel %vm445_vm3, %v442_v24, %v443_v29 }
  0xee   :  { %v463_v31 = vsel %vm462_vm5, %v460_v25, %v461_v30  ;;  %v446_v33 = vsel %vm445_vm3, %v443_v29, %v444_v17  ;;  %v466_v40 = vsel %vm462_vm5, %v461_v30, %v458_v18 }
  0xf2   :  { %567 = vmatmul.f32.gmra.mxu3 %v386_v14 }
  0xf5   :  { %538 = vmatmul.f32.gmra.mxu2 %v448_v26  ;;  %699 = vmatmul.msk.f32.gmra.mxu0 %vm704_vm6, %v464_v27 }
  0xfa   :  { %570 = vmatmul.f32.gmra.mxu3 %v387_v22 }
  0xfd   :  { %697 = vmatmul.msk.f32.gmra.mxu2 %vm703_vm7, %v447_v43  ;;  %599 = vmatmul.f32.gmra.mxu0 %v463_v31 }
 0x102   :  { %573 = vmatmul.f32.gmra.mxu3 %v388_v13 }
 0x105   :  { %544 = vmatmul.f32.gmra.mxu2 %v446_v33  ;;  %701 = vmatmul.msk.f32.gmra.mxu0 %vm705_vm8, %v466_v40 }
 0x16a   :  { %v594_v34 = vpop.f32.mrf.mxu0 }
 0x16d   :  { %v565_v35 = vpop.f32.mrf.mxu3 }
 0x170   :  { %v536_v36 = vpop.f32.mrf.mxu2 }
 0x171   :  { %v566_v38 = vadd.f32 %v565_v35, %v536_v36 }
 0x172   :  { %v597_v41 = vpop.f32.mrf.mxu0 }
 0x173   :  { %v595_v39 = vadd.f32 %v594_v34, %v566_v38 }
 0x175   :  { %606 = vst [vmem:[%s1158_s6] sm:$0xff] %v595_v39  ;;  %v568_v37 = vpop.f32.mrf.mxu3  ;;  %v620_v53 = vmul.f32 %v595_v39, %v595_v39 }
 0x178   :  { %v539_v42 = vpop.f32.mrf.mxu2 }
 0x179   :  { %v569_v44 = vadd.f32 %v568_v37, %v539_v42 }
 0x17a   :  { %v600_v46 = vpop.f32.mrf.mxu0 }
 0x17b   :  { %v598_v45 = vadd.f32 %v597_v41, %v569_v44 }
 0x17d   :  { %607 = vst [vmem:[%s1158_s6 + $0x8] sm:$0xff] %v598_v45  ;;  %v571_v1 = vpop.f32.mrf.mxu3  ;;  %v621_v50 = vmul.f32 %v598_v45, %v598_v45  ;;  %v610_v54 = vadd.f32 %v598_v45, %v595_v39 }
 0x17f   :  { %v624_v58 = vadd.f32 %v621_v50, %v620_v53 }
 0x180   :  { %v542_v47 = vpop.f32.mrf.mxu2 }
 0x181   :  { %v572_v48 = vadd.f32 %v571_v1, %v542_v47 }
 0x182   :  { %v603_v57 = vpop.f32.mrf.mxu0 }
 0x183   :  { %v601_v49 = vadd.f32 %v600_v46, %v572_v48 }
 0x185   :  { %608 = vst [vmem:[%s1158_s6 + $0x10] sm:$0xff] %v601_v49  ;;  %v574_v51 = vpop.f32.mrf.mxu3  ;;  %v622_v55 = vmul.f32 %v601_v49, %v601_v49  ;;  %v611_v59 = vadd.f32 %v610_v54, %v601_v49 }
 0x187   :  { %v625_v61 = vadd.f32 %v624_v58, %v622_v55 }
 0x188   :  { %v545_v52 = vpop.f32.mrf.mxu2 }
 0x189   :  { %v575_v56 = vadd.f32 %v574_v51, %v545_v52 }
 0x18b   :  { %v604_v60 = vadd.f32 %v603_v57, %v575_v56 }
 0x18d   :  { %609 = vst [vmem:[%s1158_s6 + $0x18] sm:$0xff] %v604_v60  ;;  %v612_v62 = vadd.f32 %v611_v59, %v604_v60  ;;  %v623_v63 = vmul.f32 %v604_v60, %v604_v60 }
 0x18f   :  { %v613_v0 = vrot.slane %v612_v62, 4  ;;  %v626_v2 = vadd.f32 %v625_v61, %v623_v63 }
 0x191   :  { %v614_v3 = vadd.f32 %v613_v0, %v612_v62  ;;  %v627_v4 = vrot.slane %v626_v2, 4 }
 0x193   :  { %v615_v5 = vrot.slane %v614_v3, 2  ;;  %v628_v6 = vadd.f32 %v627_v4, %v626_v2 }
 0x195   :  { %v616_v7 = vadd.f32 %v615_v5, %v614_v3  ;;  %v629_v8 = vrot.slane %v628_v6, 2 }
 0x197   :  { %v617_v9 = vrot.slane %v616_v7, 1  ;;  %v630_v10 = vadd.f32 %v629_v8, %v628_v6 }
 0x199   :  { %v618_v11 = vadd.f32 %v617_v9, %v616_v7  ;;  %v631_v12 = vrot.slane %v630_v10, 1 }
 0x19b   :  { %619 = vst [vmem:[%s1159_s7] sm:$0x1] %v618_v11  ;;  %v632_v13 = vadd.f32 %v631_v12, %v630_v10 }
 0x19d   :  { %633 = vst [vmem:[%s1160_s8] sm:$0x1] %v632_v13 }

</bundles_post_ra>
